<compile_context>
chip_gen: v5e
topology: v5e:2x2
jax: 0.10.0
libtpu: 0.0.40
codegen_flags: <defaults>
</compile_context>

<pallas_src>
import jax
import jax.numpy as jnp
from jax import lax
from jax.experimental import pallas as pl
from jax.experimental.pallas import tpu as pltpu


# ---------------------------------------------------------------------------
# Fused Pallas kernel: conv1 -> relu -> conv2 -> relu -> linear
# ---------------------------------------------------------------------------
def _gnn_fused_kernel(xpack_ref, ea_ref, g_ref, s_ref,
                      w1cat_ref, w2a_ref, w2bcat_ref, wrootb_ref, small_ref,
                      o_ref):
    f32, bf16 = jnp.float32, jnp.bfloat16
    H = w2a_ref.shape[1]          # hidden
    C = H                         # layer-2 in_channels (== hidden for this module)
    KC = H * C

    def mxu(lhs, rhs):
        # bf16-operand MXU matmul with f32 accumulation (weights arrive pre-cast: astype is a no-op).
        return jnp.dot(lhs.astype(bf16), rhs.astype(bf16), preferred_element_type=f32)

    small = small_ref[...]                      # [8, 2H] f32 packed small tensors (one DMA)
    b1cat  = small[0:1, :]                      # [1, 2H] edge-MLP-1 biases (layer1 | layer2)
    b2a    = small[1:2, :H]                     # [1, H]  edge-MLP-2 bias, layer 1
    wroota = small[2:3, :H]                     # [1, H]  layer-1 root weight (in_c = 1)
    bconva = small[3:4, :H]                     # [1, H]  layer-1 conv bias
    bconvb = small[4:5, :H]                     # [1, H]  layer-2 conv bias
    lw     = small[5:6, :H]                     # [1, H]  final Linear weight row
    lb     = small[6:7, 0:1]                    # [1, 1]  final Linear bias

    xp = xpack_ref[...]                         # [N, 2] f32
    x, inv_deg = xp[:, 0:1], xp[:, 1:2]         # node features / exact f32 1/deg mean weights
    ea = ea_ref[...]                            # [E, F] bf16 edge attributes
    g = g_ref[...]                              # [E, N] bf16 one-hot source gather
    s = s_ref[...]                              # [N, E] bf16 one-hot target scatter (unnormalized)

    # Fused edge-MLP first layer of BOTH conv layers: one [E,F]@[F,2H] MXU call.
    h1_both = jnp.maximum(mxu(ea, w1cat_ref[...]) + b1cat, 0.0)        # [E, 2H]
    h1, h1b = h1_both[:, :H], h1_both[:, H:]                           # [E, H] each

    # ---------------- layer 1 (in_c = 1): msg_e = x[src_e] * theta1_e ----------------
    theta1 = mxu(h1, w2a_ref[...]) + b2a                               # [E, H]
    x_src1 = mxu(g, x)                                                 # [E, 1] gather x[src]
    msg1 = x_src1 * theta1                                             # [E, H]
    agg1 = mxu(s, msg1) * inv_deg                                      # [N, H] exact-weight mean
    h = jnp.maximum(agg1 + x * wroota + bconva, 0.0)                   # [N, H]
    # Dropout(p=0.2) is identity in eval mode.

    # ---------------- layer 2 (in_c = H): bilinear message as one big MXU matmul ----------------
    x_src = mxu(g, h)                                                  # [E, C] gather h[src]
    # 0/1 selectors generated in-kernel (no HBM traffic):
    #   r_rep[k, j] = (j // C == k)  -> h_rep[e, k*C+c] = h1b[e, k]
    #   t_til[c, j] = (j %  C == c)  -> x_til[e, k*C+c] = x_src[e, c]   (C is a power of two)
    jj = lax.broadcasted_iota(jnp.int32, (H, KC), 1)
    kk = lax.broadcasted_iota(jnp.int32, (H, KC), 0)
    r_rep = jnp.where((jj >= kk * C) & (jj < kk * C + C), 1.0, 0.0).astype(bf16)   # [K, KC]
    t_til = jnp.where(jnp.bitwise_and(jj, C - 1) == kk, 1.0, 0.0).astype(bf16)     # [C, KC]
    h_rep = mxu(h1b, r_rep)                                            # [E, KC]
    x_til = mxu(x_src, t_til)                                          # [E, KC]
    q = h_rep * x_til                                                  # [E, KC] per-edge outer product
    qx = jnp.concatenate([q.astype(bf16), x_src.astype(bf16)], axis=1) # [E, KC + C]
    msg2 = jnp.dot(qx, w2bcat_ref[...], preferred_element_type=f32)    # [E, H] (theta + bias folded)
    agg2 = mxu(s, msg2) * inv_deg                                      # [N, H]
    h2 = jnp.maximum(agg2 + mxu(h, wrootb_ref[...]) + bconvb, 0.0)     # [N, H]

    # ---------------- final Linear(hidden, 1), lane-dense [1, N] output ----------------
    out_row = lax.dot_general(lw.astype(bf16), h2.astype(bf16),
                              (((1,), (1,)), ((), ())), preferred_element_type=f32)  # [1, N]
    o_ref[...] = out_row + lb


# ---------------------------------------------------------------------------
# One-time parameter preprocessing (hoisted out of the per-call path)
# ---------------------------------------------------------------------------
def prepare_params(params, *, hidden=32):
    assert len(params["layers"]) == 2, "fused kernel is specialized for n_layers=2 (module default)"
    (w1a, b1a, w2a, b2a, wroota, bconva), (w1b, b1b, w2b, b2b, wrootb, bconvb) = params["layers"]
    C = params["in_channels"][1]
    K = H = hidden
    assert C == H and (C & (C - 1)) == 0, "in-kernel tile selector assumes in_c2 == hidden == power of two"
    bf16 = jnp.bfloat16

    w1cat = jnp.concatenate([w1a, w1b], axis=1).astype(bf16)            # [F, 2H]
    # Layer-2 theta weights flattened so the bilinear message is one matmul; bias rows appended.
    w2b_r = w2b.reshape(K, C, H).reshape(K * C, H)                      # [(k*C+c), h] = w2b[k, c*H+h]
    b2b_r = b2b.reshape(C, H)                                           # [c, h]      = b2b[0, c*H+h]
    w2bcat = jnp.concatenate([w2b_r, b2b_r], axis=0).astype(bf16)       # [K*C + C, H]
    lw_row = params["lin_w"].T                                          # [1, H]
    lb = params["lin_b"]                                                # [1, 1]

    zeros_h = jnp.zeros((1, H), jnp.float32)
    pad = lambda v: jnp.concatenate([v, zeros_h], axis=1)               # [1,H] -> [1,2H]
    small = jnp.concatenate([
        jnp.concatenate([b1a, b1b], axis=1),   # row 0: edge-MLP-1 biases (layer1 | layer2)
        pad(b2a),                              # row 1
        pad(wroota),                           # row 2
        pad(bconva),                           # row 3
        pad(bconvb),                           # row 4
        pad(lw_row),                           # row 5
        pad(jnp.broadcast_to(lb, (1, H))),     # row 6 (lin bias broadcast)
        jnp.zeros((1, 2 * H), jnp.float32),    # row 7: pad to full (8, 2H) sublane tile
    ], axis=0).astype(jnp.float32)             # [8, 2H]

    return {"w1cat": w1cat, "w2a": w2a.astype(bf16), "w2bcat": w2bcat,
            "wrootb": wrootb.astype(bf16), "small": small, "hidden": H}


# ---------------------------------------------------------------------------
# Per-call wrapper
# ---------------------------------------------------------------------------
def _full_spec(arr):
    nd = arr.ndim
    return pl.BlockSpec(arr.shape, lambda i, _nd=nd: (0,) * _nd)


def node_classifier_gnn_forward(prep, x, edge_index, edge_attr):
    """Forward pass equivalent to NodeClassifierGNN.forward (eval mode). Fused single kernel."""
    N = x.shape[0]
    src, tgt = edge_index[0], edge_index[1]
    bf16 = jnp.bfloat16

    # Graph-dependent glue (no float hot-path compute): 0/1 one-hots are exact in bf16; the
    # 1/deg mean weights stay exact f32 and are applied on the VPU inside the kernel.
    # TODO(synk): for large graphs / v7x, replace dense O(E*N) one-hots with scalar-prefetched
    #             src/tgt indices (PrefetchScalarGridSpec -> SMEM) + in-kernel gather/segment-mean,
    #             and batch graphs / tile edges over a 'parallel' grid axis to use both v7x TCs.
    g = (jnp.arange(N)[None, :] == src[:, None]).astype(bf16)            # [E, N] src one-hot
    s_f = (jnp.arange(N)[:, None] == tgt[None, :]).astype(jnp.float32)   # [N, E] tgt one-hot
    inv_deg = 1.0 / jnp.maximum(s_f.sum(axis=1, keepdims=True), 1.0)     # [N, 1] (0-deg nodes -> agg 0)
    s = s_f.astype(bf16)
    xpack = jnp.concatenate([x, inv_deg], axis=1)                        # [N, 2]
    ea = edge_attr.astype(bf16)                                          # MXU-only operand

    args = (xpack, ea, g, s,
            prep["w1cat"], prep["w2a"], prep["w2bcat"], prep["wrootb"], prep["small"])

    out_row = pl.pallas_call(
        _gnn_fused_kernel,
        out_shape=jax.ShapeDtypeStruct((1, N), jnp.float32),
        grid=(1,),
        in_specs=[_full_spec(v) for v in args],
        out_specs=pl.BlockSpec((1, N), lambda i: (0, 0)),
        compiler_params=pltpu.CompilerParams(dimension_semantics=("arbitrary",)),
    )(*args)
    return out_row[0]                                                    # [N]


# ---------------------------------------------------------------------------
# Deterministic parameter initialization (shapes from NodeClassifierGNN.__init__)
# ---------------------------------------------------------------------------
def init_params(key, edge_in_dim=154, hidden=32, n_layers=2):
    def uniform(k, shape, fan_in):
        bound = 1.0 / jnp.sqrt(jnp.float32(fan_in))
        return jax.random.uniform(k, shape, jnp.float32, -bound, bound)

    keys = iter(jax.random.split(key, 8 * n_layers + 4))
    layers, in_channels = [], []
    in_c = 1
    for _ in range(n_layers):
        w1 = uniform(next(keys), (edge_in_dim, hidden), edge_in_dim)          # edge_nn Linear 1 (transposed)
        b1 = uniform(next(keys), (1, hidden), edge_in_dim)
        w2 = uniform(next(keys), (hidden, in_c * hidden), hidden)             # edge_nn Linear 2 (transposed)
        b2 = uniform(next(keys), (1, in_c * hidden), hidden)
        wroot = uniform(next(keys), (in_c, hidden), in_c)                     # NNConv root weight
        bconv = uniform(next(keys), (1, hidden), in_c)                        # NNConv bias
        layers.append((w1, b1, w2, b2, wroot, bconv))
        in_channels.append(in_c)
        in_c = hidden
    lin_w = uniform(next(keys), (hidden, 1), hidden)                          # final Linear(hidden, 1)
    lin_b = uniform(next(keys), (1, 1), hidden)
    return {"layers": layers, "in_channels": in_channels, "lin_w": lin_w, "lin_b": lin_b}


# ---------------------------------------------------------------------------
# Pure-JAX f32 reference (eval-mode semantics) for a tolerance check
# ---------------------------------------------------------------------------
def _reference_forward(params, x, edge_index, edge_attr):
    src, tgt = edge_index[0], edge_index[1]
    N = x.shape[0]
    h = x
    for (w1, b1, w2, b2, wroot, bconv), in_c in zip(params["layers"], params["in_channels"]):
        hidden = w1.shape[1]
        e_h = jnp.maximum(edge_attr @ w1 + b1, 0.0)
        theta = (e_h @ w2 + b2).reshape(-1, in_c, hidden)                 # [E, in_c, H]
        msg = jnp.einsum("ec,ech->eh", h[src], theta)                     # [E, H]
        seg = jax.ops.segment_sum(msg, tgt, num_segments=N)
        deg = jax.ops.segment_sum(jnp.ones((msg.shape[0],), jnp.float32), tgt, num_segments=N)
        agg = seg / jnp.maximum(deg, 1.0)[:, None]
        h = jnp.maximum(agg + h @ wroot + bconv, 0.0)                     # dropout == identity (eval)
    return (h @ params["lin_w"] + params["lin_b"]).squeeze(-1)


# ---------------------------------------------------------------------------
if __name__ == "__main__":
    key = jax.random.PRNGKey(0)
    k_param, k_x, k_src, k_tgt, k_ea = jax.random.split(key, 5)

    N, E = 16, 48
    edge_in_dim, hidden, n_layers = 154, 32, 2

    x = jax.random.normal(k_x, (N, 1), jnp.float32)                     # data.x
    src = jax.random.randint(k_src, (E,), 0, N)
    tgt = jax.random.randint(k_tgt, (E,), 0, N)
    edge_index = jnp.stack([src, tgt], axis=0)                          # data.edge_index  [2, E]
    edge_attr = jax.random.normal(k_ea, (E, edge_in_dim), jnp.float32)  # data.edge_attr   [E, 154]

    params = init_params(k_param, edge_in_dim=edge_in_dim, hidden=hidden, n_layers=n_layers)
    prep = prepare_params(params, hidden=hidden)                         # one-time weight prep

    out = node_classifier_gnn_forward(prep, x, edge_index, edge_attr)
    out = jax.block_until_ready(out)

    assert out.shape == (N,) and out.dtype == jnp.float32
    assert bool(jnp.all(jnp.isfinite(out)))

    ref = _reference_forward(params, x, edge_index, edge_attr)
    assert bool(jnp.allclose(out, ref, rtol=5e-2, atol=5e-2)), \
        f"max |diff| = {float(jnp.max(jnp.abs(out - ref)))}"

    print("KERNEL_OK")
</pallas_src>

<mosaic_0001>
module attributes {stable_mosaic.version = 11 : i64} {
  func.func @_gnn_fused_kernel(%arg0: i32, %arg1: memref<16x2xf32, #tpu.memory_space<vmem>>, %arg2: memref<48x154xbf16, #tpu.memory_space<vmem>>, %arg3: memref<48x16xbf16, #tpu.memory_space<vmem>>, %arg4: memref<16x48xbf16, #tpu.memory_space<vmem>>, %arg5: memref<154x64xbf16, #tpu.memory_space<vmem>>, %arg6: memref<32x32xbf16, #tpu.memory_space<vmem>>, %arg7: memref<1056x32xbf16, #tpu.memory_space<vmem>>, %arg8: memref<32x32xbf16, #tpu.memory_space<vmem>>, %arg9: memref<8x64xf32, #tpu.memory_space<vmem>>, %arg10: memref<1x16xf32, #tpu.memory_space<vmem>>) attributes {dimension_semantics = [#tpu.dimension_semantics<arbitrary>], iteration_bounds = array<i64: 1>, scalar_prefetch = 0 : i64, scratch_operands = 0 : i64, tpu.core_type = #tpu.core_type<tc>, window_params = [{pipeline_mode = #tpu.pipeline_mode<synchronous>, transform_indices = @transform_0, window_bounds = array<i64: 16, 2>}, {pipeline_mode = #tpu.pipeline_mode<synchronous>, transform_indices = @transform_1, window_bounds = array<i64: 48, 154>}, {pipeline_mode = #tpu.pipeline_mode<synchronous>, transform_indices = @transform_2, window_bounds = array<i64: 48, 16>}, {pipeline_mode = #tpu.pipeline_mode<synchronous>, transform_indices = @transform_3, window_bounds = array<i64: 16, 48>}, {pipeline_mode = #tpu.pipeline_mode<synchronous>, transform_indices = @transform_4, window_bounds = array<i64: 154, 64>}, {pipeline_mode = #tpu.pipeline_mode<synchronous>, transform_indices = @transform_5, window_bounds = array<i64: 32, 32>}, {pipeline_mode = #tpu.pipeline_mode<synchronous>, transform_indices = @transform_6, window_bounds = array<i64: 1056, 32>}, {pipeline_mode = #tpu.pipeline_mode<synchronous>, transform_indices = @transform_7, window_bounds = array<i64: 32, 32>}, {pipeline_mode = #tpu.pipeline_mode<synchronous>, transform_indices = @transform_8, window_bounds = array<i64: 8, 64>}, {pipeline_mode = #tpu.pipeline_mode<synchronous>, transform_indices = @transform_9, window_bounds = array<i64: 1, 16>}]} {
    %c0 = arith.constant 0 : index
    %c0_0 = arith.constant 0 : index
    %0 = vector.load %arg9[%c0, %c0_0] : memref<8x64xf32, #tpu.memory_space<vmem>>, vector<8x64xf32>
    %1 = vector.extract_strided_slice %0 {offsets = [0, 0], sizes = [1, 64], strides = [1, 1]} : vector<8x64xf32> to vector<1x64xf32>
    %2 = vector.extract_strided_slice %0 {offsets = [1, 0], sizes = [1, 32], strides = [1, 1]} : vector<8x64xf32> to vector<1x32xf32>
    %3 = vector.extract_strided_slice %0 {offsets = [2, 0], sizes = [1, 32], strides = [1, 1]} : vector<8x64xf32> to vector<1x32xf32>
    %4 = vector.extract_strided_slice %0 {offsets = [3, 0], sizes = [1, 32], strides = [1, 1]} : vector<8x64xf32> to vector<1x32xf32>
    %5 = vector.extract_strided_slice %0 {offsets = [4, 0], sizes = [1, 32], strides = [1, 1]} : vector<8x64xf32> to vector<1x32xf32>
    %6 = vector.extract_strided_slice %0 {offsets = [5, 0], sizes = [1, 32], strides = [1, 1]} : vector<8x64xf32> to vector<1x32xf32>
    %7 = vector.extract_strided_slice %0 {offsets = [6, 0], sizes = [1, 1], strides = [1, 1]} : vector<8x64xf32> to vector<1x1xf32>
    %c0_1 = arith.constant 0 : index
    %c0_2 = arith.constant 0 : index
    %8 = vector.load %arg1[%c0_1, %c0_2] : memref<16x2xf32, #tpu.memory_space<vmem>>, vector<16x2xf32>
    %9 = vector.extract_strided_slice %8 {offsets = [0, 0], sizes = [16, 1], strides = [1, 1]} : vector<16x2xf32> to vector<16x1xf32>
    %10 = vector.extract_strided_slice %8 {offsets = [0, 1], sizes = [16, 1], strides = [1, 1]} : vector<16x2xf32> to vector<16x1xf32>
    %c0_3 = arith.constant 0 : index
    %c0_4 = arith.constant 0 : index
    %11 = vector.load %arg2[%c0_3, %c0_4] : memref<48x154xbf16, #tpu.memory_space<vmem>>, vector<48x154xbf16>
    %c0_5 = arith.constant 0 : index
    %c0_6 = arith.constant 0 : index
    %12 = vector.load %arg3[%c0_5, %c0_6] : memref<48x16xbf16, #tpu.memory_space<vmem>>, vector<48x16xbf16>
    %c0_7 = arith.constant 0 : index
    %c0_8 = arith.constant 0 : index
    %13 = vector.load %arg4[%c0_7, %c0_8] : memref<16x48xbf16, #tpu.memory_space<vmem>>, vector<16x48xbf16>
    %c0_9 = arith.constant 0 : index
    %c0_10 = arith.constant 0 : index
    %14 = vector.load %arg5[%c0_9, %c0_10] : memref<154x64xbf16, #tpu.memory_space<vmem>>, vector<154x64xbf16>
    %cst = arith.constant dense<0.000000e+00> : vector<48x64xf32>
    %15 = tpu.matmul %11, %14, %cst {dimension_numbers = #tpu.dot_dimension_numbers<[1], [0], [0], [1], [0, 0, 1, 1], [], []>} : vector<48x154xbf16>, vector<154x64xbf16>, vector<48x64xf32> -> vector<48x64xf32>
    %16 = vector.broadcast %1 : vector<1x64xf32> to vector<48x64xf32>
    %17 = arith.addf %15, %16 : vector<48x64xf32>
    %cst_11 = arith.constant 0.000000e+00 : f32
    %18 = vector.broadcast %cst_11 : f32 to vector<48x64xf32>
    %19 = arith.maximumf %17, %18 : vector<48x64xf32>
    %20 = vector.extract_strided_slice %19 {offsets = [0, 0], sizes = [48, 32], strides = [1, 1]} : vector<48x64xf32> to vector<48x32xf32>
    %21 = vector.extract_strided_slice %19 {offsets = [0, 32], sizes = [48, 32], strides = [1, 1]} : vector<48x64xf32> to vector<48x32xf32>
    %c0_12 = arith.constant 0 : index
    %c0_13 = arith.constant 0 : index
    %22 = vector.load %arg6[%c0_12, %c0_13] : memref<32x32xbf16, #tpu.memory_space<vmem>>, vector<32x32xbf16>
    %23 = arith.truncf %20 : vector<48x32xf32> to vector<48x32xbf16>
    %cst_14 = arith.constant dense<0.000000e+00> : vector<48x32xf32>
    %24 = tpu.matmul %23, %22, %cst_14 {dimension_numbers = #tpu.dot_dimension_numbers<[1], [0], [0], [1], [0, 0, 1, 1], [], []>} : vector<48x32xbf16>, vector<32x32xbf16>, vector<48x32xf32> -> vector<48x32xf32>
    %25 = vector.broadcast %2 : vector<1x32xf32> to vector<48x32xf32>
    %26 = arith.addf %24, %25 : vector<48x32xf32>
    %27 = arith.truncf %9 : vector<16x1xf32> to vector<16x1xbf16>
    %cst_15 = arith.constant dense<0.000000e+00> : vector<48x1xf32>
    %28 = tpu.matmul %12, %27, %cst_15 {dimension_numbers = #tpu.dot_dimension_numbers<[1], [0], [0], [1], [0, 0, 1, 1], [], []>} : vector<48x16xbf16>, vector<16x1xbf16>, vector<48x1xf32> -> vector<48x1xf32>
    %29 = vector.broadcast %28 : vector<48x1xf32> to vector<48x32xf32>
    %30 = arith.mulf %29, %26 : vector<48x32xf32>
    %31 = arith.truncf %30 : vector<48x32xf32> to vector<48x32xbf16>
    %cst_16 = arith.constant dense<0.000000e+00> : vector<16x32xf32>
    %32 = tpu.matmul %13, %31, %cst_16 {dimension_numbers = #tpu.dot_dimension_numbers<[1], [0], [0], [1], [0, 0, 1, 1], [], []>} : vector<16x48xbf16>, vector<48x32xbf16>, vector<16x32xf32> -> vector<16x32xf32>
    %33 = vector.broadcast %10 : vector<16x1xf32> to vector<16x32xf32>
    %34 = arith.mulf %32, %33 : vector<16x32xf32>
    %35 = vector.broadcast %9 : vector<16x1xf32> to vector<16x32xf32>
    %36 = vector.broadcast %3 : vector<1x32xf32> to vector<16x32xf32>
    %37 = arith.mulf %35, %36 : vector<16x32xf32>
    %38 = arith.addf %34, %37 : vector<16x32xf32>
    %39 = vector.broadcast %4 : vector<1x32xf32> to vector<16x32xf32>
    %40 = arith.addf %38, %39 : vector<16x32xf32>
    %cst_17 = arith.constant 0.000000e+00 : f32
    %41 = vector.broadcast %cst_17 : f32 to vector<16x32xf32>
    %42 = arith.maximumf %40, %41 : vector<16x32xf32>
    %43 = arith.truncf %42 : vector<16x32xf32> to vector<16x32xbf16>
    %cst_18 = arith.constant dense<0.000000e+00> : vector<48x32xf32>
    %44 = tpu.matmul %12, %43, %cst_18 {dimension_numbers = #tpu.dot_dimension_numbers<[1], [0], [0], [1], [0, 0, 1, 1], [], []>} : vector<48x16xbf16>, vector<16x32xbf16>, vector<48x32xf32> -> vector<48x32xf32>
    %45 = tpu.iota {dimensions = array<i32: 1>} : vector<32x1024xi32>
    %46 = tpu.iota {dimensions = array<i32: 0>} : vector<32x1024xi32>
    %c32_i32 = arith.constant 32 : i32
    %47 = vector.broadcast %c32_i32 : i32 to vector<32x1024xi32>
    %48 = arith.muli %46, %47 : vector<32x1024xi32>
    %49 = arith.cmpi sge, %45, %48 : vector<32x1024xi32>
    %c32_i32_19 = arith.constant 32 : i32
    %50 = vector.broadcast %c32_i32_19 : i32 to vector<32x1024xi32>
    %51 = arith.muli %46, %50 : vector<32x1024xi32>
    %c32_i32_20 = arith.constant 32 : i32
    %52 = vector.broadcast %c32_i32_20 : i32 to vector<32x1024xi32>
    %53 = arith.addi %51, %52 : vector<32x1024xi32>
    %54 = arith.cmpi slt, %45, %53 : vector<32x1024xi32>
    %55 = arith.andi %49, %54 : vector<32x1024xi1>
    %cst_21 = arith.constant 1.000000e+00 : f32
    %cst_22 = arith.constant 0.000000e+00 : f32
    %56 = vector.broadcast %cst_21 : f32 to vector<32x1024xf32>
    %57 = vector.broadcast %cst_22 : f32 to vector<32x1024xf32>
    %58 = arith.select %55, %56, %57 : vector<32x1024xi1>, vector<32x1024xf32>
    %59 = arith.truncf %58 : vector<32x1024xf32> to vector<32x1024xbf16>
    %c31_i32 = arith.constant 31 : i32
    %60 = vector.broadcast %c31_i32 : i32 to vector<32x1024xi32>
    %61 = arith.andi %45, %60 : vector<32x1024xi32>
    %62 = arith.cmpi eq, %61, %46 : vector<32x1024xi32>
    %cst_23 = arith.constant 1.000000e+00 : f32
    %cst_24 = arith.constant 0.000000e+00 : f32
    %63 = vector.broadcast %cst_23 : f32 to vector<32x1024xf32>
    %64 = vector.broadcast %cst_24 : f32 to vector<32x1024xf32>
    %65 = arith.select %62, %63, %64 : vector<32x1024xi1>, vector<32x1024xf32>
    %66 = arith.truncf %65 : vector<32x1024xf32> to vector<32x1024xbf16>
    %67 = arith.truncf %21 : vector<48x32xf32> to vector<48x32xbf16>
    %cst_25 = arith.constant dense<0.000000e+00> : vector<48x1024xf32>
    %68 = tpu.matmul %67, %59, %cst_25 {dimension_numbers = #tpu.dot_dimension_numbers<[1], [0], [0], [1], [0, 0, 1, 1], [], []>} : vector<48x32xbf16>, vector<32x1024xbf16>, vector<48x1024xf32> -> vector<48x1024xf32>
    %69 = arith.truncf %44 : vector<48x32xf32> to vector<48x32xbf16>
    %cst_26 = arith.constant dense<0.000000e+00> : vector<48x1024xf32>
    %70 = tpu.matmul %69, %66, %cst_26 {dimension_numbers = #tpu.dot_dimension_numbers<[1], [0], [0], [1], [0, 0, 1, 1], [], []>} : vector<48x32xbf16>, vector<32x1024xbf16>, vector<48x1024xf32> -> vector<48x1024xf32>
    %71 = arith.mulf %68, %70 : vector<48x1024xf32>
    %72 = arith.truncf %71 : vector<48x1024xf32> to vector<48x1024xbf16>
    %73 = arith.truncf %44 : vector<48x32xf32> to vector<48x32xbf16>
    %74 = tpu.concatenate %72, %73 in 1 : vector<48x1024xbf16>, vector<48x32xbf16> -> vector<48x1056xbf16>
    %c0_27 = arith.constant 0 : index
    %c0_28 = arith.constant 0 : index
    %75 = vector.load %arg7[%c0_27, %c0_28] : memref<1056x32xbf16, #tpu.memory_space<vmem>>, vector<1056x32xbf16>
    %cst_29 = arith.constant dense<0.000000e+00> : vector<48x32xf32>
    %76 = tpu.matmul %74, %75, %cst_29 {dimension_numbers = #tpu.dot_dimension_numbers<[1], [0], [0], [1], [0, 0, 1, 1], [], []>} : vector<48x1056xbf16>, vector<1056x32xbf16>, vector<48x32xf32> -> vector<48x32xf32>
    %77 = arith.truncf %76 : vector<48x32xf32> to vector<48x32xbf16>
    %cst_30 = arith.constant dense<0.000000e+00> : vector<16x32xf32>
    %78 = tpu.matmul %13, %77, %cst_30 {dimension_numbers = #tpu.dot_dimension_numbers<[1], [0], [0], [1], [0, 0, 1, 1], [], []>} : vector<16x48xbf16>, vector<48x32xbf16>, vector<16x32xf32> -> vector<16x32xf32>
    %79 = vector.broadcast %10 : vector<16x1xf32> to vector<16x32xf32>
    %80 = arith.mulf %78, %79 : vector<16x32xf32>
    %c0_31 = arith.constant 0 : index
    %c0_32 = arith.constant 0 : index
    %81 = vector.load %arg8[%c0_31, %c0_32] : memref<32x32xbf16, #tpu.memory_space<vmem>>, vector<32x32xbf16>
    %82 = arith.truncf %42 : vector<16x32xf32> to vector<16x32xbf16>
    %cst_33 = arith.constant dense<0.000000e+00> : vector<16x32xf32>
    %83 = tpu.matmul %82, %81, %cst_33 {dimension_numbers = #tpu.dot_dimension_numbers<[1], [0], [0], [1], [0, 0, 1, 1], [], []>} : vector<16x32xbf16>, vector<32x32xbf16>, vector<16x32xf32> -> vector<16x32xf32>
    %84 = arith.addf %80, %83 : vector<16x32xf32>
    %85 = vector.broadcast %5 : vector<1x32xf32> to vector<16x32xf32>
    %86 = arith.addf %84, %85 : vector<16x32xf32>
    %cst_34 = arith.constant 0.000000e+00 : f32
    %87 = vector.broadcast %cst_34 : f32 to vector<16x32xf32>
    %88 = arith.maximumf %86, %87 : vector<16x32xf32>
    %89 = arith.truncf %6 : vector<1x32xf32> to vector<1x32xbf16>
    %90 = arith.truncf %88 : vector<16x32xf32> to vector<16x32xbf16>
    %cst_35 = arith.constant dense<0.000000e+00> : vector<1x16xf32>
    %91 = tpu.matmul %89, %90, %cst_35 {dimension_numbers = #tpu.dot_dimension_numbers<[1], [1], [0], [0], [0, 0, 1, 0], [], []>} : vector<1x32xbf16>, vector<16x32xbf16>, vector<1x16xf32> -> vector<1x16xf32>
    %92 = vector.broadcast %7 : vector<1x1xf32> to vector<1x16xf32>
    %93 = arith.addf %91, %92 : vector<1x16xf32>
    %c0_36 = arith.constant 0 : index
    %c0_37 = arith.constant 0 : index
    %94 = vector.load %arg10[%c0_36, %c0_37] : memref<1x16xf32, #tpu.memory_space<vmem>>, vector<1x16xf32>
    tpu.vector_store %arg10[%c0_36, %c0_37], %93 {strides = array<i32>} : memref<1x16xf32, #tpu.memory_space<vmem>>, vector<1x16xf32>,
    return
  }
  func.func @transform_0(%arg0: i32) -> (i32, i32) {
    %c0_i32 = arith.constant 0 : i32
    %c0_i32_0 = arith.constant 0 : i32
    %c0_i32_1 = arith.constant 0 : i32
    return %c0_i32, %c0_i32_0 : i32, i32
  }
  func.func @transform_1(%arg0: i32) -> (i32, i32) {
    %c0_i32 = arith.constant 0 : i32
    %c0_i32_0 = arith.constant 0 : i32
    %c0_i32_1 = arith.constant 0 : i32
    return %c0_i32, %c0_i32_0 : i32, i32
  }
  func.func @transform_2(%arg0: i32) -> (i32, i32) {
    %c0_i32 = arith.constant 0 : i32
    %c0_i32_0 = arith.constant 0 : i32
    %c0_i32_1 = arith.constant 0 : i32
    return %c0_i32, %c0_i32_0 : i32, i32
  }
  func.func @transform_3(%arg0: i32) -> (i32, i32) {
    %c0_i32 = arith.constant 0 : i32
    %c0_i32_0 = arith.constant 0 : i32
    %c0_i32_1 = arith.constant 0 : i32
    return %c0_i32, %c0_i32_0 : i32, i32
  }
  func.func @transform_4(%arg0: i32) -> (i32, i32) {
    %c0_i32 = arith.constant 0 : i32
    %c0_i32_0 = arith.constant 0 : i32
    %c0_i32_1 = arith.constant 0 : i32
    return %c0_i32, %c0_i32_0 : i32, i32
  }
  func.func @transform_5(%arg0: i32) -> (i32, i32) {
    %c0_i32 = arith.constant 0 : i32
    %c0_i32_0 = arith.constant 0 : i32
    %c0_i32_1 = arith.constant 0 : i32
    return %c0_i32, %c0_i32_0 : i32, i32
  }
  func.func @transform_6(%arg0: i32) -> (i32, i32) {
    %c0_i32 = arith.constant 0 : i32
    %c0_i32_0 = arith.constant 0 : i32
    %c0_i32_1 = arith.constant 0 : i32
    return %c0_i32, %c0_i32_0 : i32, i32
  }
  func.func @transform_7(%arg0: i32) -> (i32, i32) {
    %c0_i32 = arith.constant 0 : i32
    %c0_i32_0 = arith.constant 0 : i32
    %c0_i32_1 = arith.constant 0 : i32
    return %c0_i32, %c0_i32_0 : i32, i32
  }
  func.func @transform_8(%arg0: i32) -> (i32, i32) {
    %c0_i32 = arith.constant 0 : i32
    %c0_i32_0 = arith.constant 0 : i32
    %c0_i32_1 = arith.constant 0 : i32
    return %c0_i32, %c0_i32_0 : i32, i32
  }
  func.func @transform_9(%arg0: i32) -> (i32, i32) {
    %c0_i32 = arith.constant 0 : i32
    %c0_i32_0 = arith.constant 0 : i32
    %c0_i32_1 = arith.constant 0 : i32
    return %c0_i32, %c0_i32_0 : i32, i32
  }
}

</mosaic_0001>

<bundles_post_ra>
// kernel: tpu_custom_call.1
= control target key start
LH: loop header
LB: loop body
LE: loop exit
PB: predicated region body
PF: predicated region fallthrough
CT: control target
= control target key end

     0   :  { %vm296_vm0 = vcmask 130048   ;;  %vm168_vm1 = vcmask 1044480   ;;  %s3759_s0 = inlined_call_operand.vmem [shape: f32[16,2], index: 0, kind: input, shape index: {}]   ;;  %s3760_s1 = inlined_call_operand.vmem [shape: bf16[48,154], index: 1, kind: input, shape index: {}]   ;;  %s3761_s2 = inlined_call_operand.vmem [shape: bf16[48,16], index: 2, kind: input, shape index: {}]   ;;  %s3762_s3 = inlined_call_operand.vmem [shape: bf16[16,48], index: 3, kind: input, shape index: {}]   ;;  %s3763_s4 = inlined_call_operand.vmem [shape: bf16[154,64], index: 4, kind: input, shape index: {}]   ;;  %s3764_s5 = inlined_call_operand.vmem [shape: bf16[32,32], index: 5, kind: input, shape index: {}]   ;;  %s3765_s6 = inlined_call_operand.vmem [shape: bf16[1056,32], index: 6, kind: input, shape index: {}]   ;;  %s3766_s7 = inlined_call_operand.vmem [shape: bf16[32,32], index: 7, kind: input, shape index: {}]   ;;  %s3767_s8 = inlined_call_operand.vmem [shape: f32[8,64], index: 8, kind: input, shape index: {}]   ;;  %s3768_s9 = inlined_call_operand.hbm [shape: f32[1,16], index: 9, kind: output, shape index: {}]  }
   0x1   :  { %v2685_v0 = vld [vmem:[%s3763_s4 + $0x38] sm:$0xff]  ;;  %v2859_v1 = vld [vmem:[%s3759_s0] sm:$0xff]  ;;  %v2864_v2 = vld [vmem:[%s3759_s0 + $0x8] sm:$0xff] }
   0x2   :  { %v280_v3 = vpack.c.bf16 %v2864_v2, %v2859_v1  ;;  %172 = vmatpush.bf16.msra.mxu0 %v2685_v0  ;;  %v2871_v4 = vld [vmem:[%s3761_s2] sm:$0xff]  ;;  %v2684_v5 = vld [vmem:[%s3763_s4 + $0x30] sm:$0xff]  ;;  %v2239_v6 = vld [vmem:[%s3763_s4 + $0x48] sm:$0xf] }
   0x3   :  { %v2687_v7 = vld [vmem:[%s3763_s4 + $0x48] sm:$0x10]  ;;  %v2686_v11 = vld [vmem:[%s3763_s4 + $0x40] sm:$0xff] }
   0x4   :  { %313 = vmatpush.bf16.msra.mxu3 %v280_v3  ;;  %v2240_v8 = vor.u32 %v2687_v7, %v2239_v6  ;;  %v2683_v9 = vld [vmem:[%s3763_s4 + $0x28] sm:$0xff]  ;;  %v2668_v12 = vld [vmem:[%s3760_s1 + $0x4] sm:$0xf] }
   0x5   :  { %v2181_v13 = vld [vmem:[%s3760_s1 + $0x8] sm:$0xf0] }
   0x6   :  { %173 = vmatpush.bf16.msra.mxu0 %v2684_v5  ;;  %v170_v10 = vsel %vm168_vm1, %v2240_v8, 0 }
   0x7   :  { %2267 = vmatmul.msk.bf16.vlgmr.msra.gmra.mxu3 %vm296_vm0, %v2871_v4  ;;  %202 = vmatpush.bf16.msra.mxu1 %v170_v10 }
   0x8   :  { %14 = vsyncpa [#allocation3], 0  ;;  %v2682_v14 = vld [vmem:[%s3763_s4 + $0x20] sm:$0xff]  ;;  %v2184_v15 = vor.u32 %v2668_v12, %v2181_v13  ;;  %vm158_vm2 = vcmask 211968   ;;  %v2681_v16 = vld [vmem:[%s3763_s4 + $0x18] sm:$0xff]  ;;  %v2798_v37 = vmov 0  }
   0x9   :  { %v2906_v17 = vld [vmem:[%s3761_s2 + $0x8] sm:$0xff]  ;;  %v2680_v18 = vld [vmem:[%s3763_s4 + $0x10] sm:$0xff]  ;;  %v2189_v21 = vld [vmem:[%s3760_s1 + $0x18] sm:$0xf0]  ;;  %2765 = vset.pattern.permute.xlu2 %v2798_v37  ;;  %2763 = vset.pattern.permute.xlu0 %v2798_v37  ;;  %v2799_v56 = vmov 1   ;;  %vm246_vm3 = vcmask 261120  }
   0xa   :  { %174 = vmatpush.bf16.msra.mxu0 %v2683_v9  ;;  %v2679_v19 = vld [vmem:[%s3763_s4 + $0x8] sm:$0xff]  ;;  %v2670_v20 = vld [vmem:[%s3760_s1 + $0x14] sm:$0xf]  ;;  %v2678_v22 = vld [vmem:[%s3763_s4] sm:$0xff]  ;;  %2764 = vset.pattern.permute.xlu1 %v2798_v37  ;;  %s2168_s13 = sshll.u32 %s3768_s9, 4  ;;  %s2169_s13 = int_to_ptr.hbm [resolvable:$true] %s2168_s13 }
   0xb   :  { %203 = vmatpush.bf16.msra.mxu1 %v2686_v11  ;;  %v2179_v23 = vld [vmem:[%s3760_s1] sm:$0xf]  ;;  %v2669_v24 = vld [vmem:[%s3760_s1 + $0x4] sm:$0xf0]  ;;  %v2192_v25 = vor.u32 %v2670_v20, %v2189_v21  ;;  %v2935_v27 = vld [vmem:[%s3761_s2 + $0x10] sm:$0xff] }
   0xc   :  { %v2180_v26 = vor.u32 %v2669_v24, %v2179_v23  ;;  %v2672_v28 = vld [vmem:[%s3760_s1 + $0x24] sm:$0xf]  ;;  %v2197_v29 = vld [vmem:[%s3760_s1 + $0x28] sm:$0xf0]  ;;  %v2187_v30 = vld [vmem:[%s3760_s1 + $0x10] sm:$0xf] }
   0xd   :  { %v2671_v31 = vld [vmem:[%s3760_s1 + $0x14] sm:$0xf0]  ;;  %v2200_v32 = vor.u32 %v2672_v28, %v2197_v29  ;;  %v2195_v34 = vld [vmem:[%s3760_s1 + $0x20] sm:$0xf]  ;;  %v2673_v35 = vld [vmem:[%s3760_s1 + $0x24] sm:$0xf0] }
   0xe   :  { %175 = vmatpush.bf16.msra.mxu0 %v2682_v14  ;;  %2241 = vmatmul.msk.bf16.vlgmr.msra.gmra.mxu1 %vm158_vm2, %v2184_v15  ;;  %v2188_v33 = vor.u32 %v2671_v31, %v2187_v30  ;;  %v2196_v36 = vor.u32 %v2673_v35, %v2195_v34  ;;  %v2689_v38 = vld [vmem:[%s3764_s5 + $0x8] sm:$0xff]  ;;  %v2688_v40 = vld [vmem:[%s3764_s5] sm:$0xff]  ;;  %s2800_s5 = smov 96  }
   0xf   :  { %262 = vmatpush.bf16.msra.mxu2 %v2689_v38  ;;  %v2968_v44 = vld [vmem:[%s3767_s8] sm:$0xff] }
  0x10   :  { %v71_v46 = vperm.slane %v2968_v44, 0 }
  0x12   :  { %176 = vmatpush.bf16.msra.mxu0 %v2681_v16 }
  0x13   :  { %263 = vmatpush.bf16.msra.mxu2 %v2688_v40 }
  0x16   :  { %177 = vmatpush.bf16.msra.mxu0 %v2680_v18 }
  0x17   :  { %2268 = vmatmul.msk.bf16.gmra.mxu3 %vm296_vm0, %v2906_v17 }
  0x1a   :  { %178 = vmatpush.bf16.msra.mxu0 %v2679_v19 }
  0x1e   :  { %179 = vmatpush.bf16.msra.mxu0 %v2678_v22  ;;  %2242 = vmatmul.msk.bf16.gmra.mxu1 %vm158_vm2, %v2192_v25 }
  0x21   :  { %180 = vmatmul.bf16.vlgmr.msra.gmra.mxu0 %v2180_v26 }
  0x27   :  { %2269 = vmatmul.msk.bf16.gmra.mxu3 %vm296_vm0, %v2935_v27 }
  0x2e   :  { %2243 = vmatmul.msk.bf16.gmra.mxu1 %vm158_vm2, %v2200_v32 }
  0x31   :  { %185 = vmatmul.bf16.gmra.mxu0 %v2188_v33 }
  0x41   :  { %190 = vmatmul.bf16.gmra.mxu0 %v2196_v36  ;;  %v2801_v36 = vmov 1.0|1.0  }
  0x8a   :  { %v315_v39 = vpop.f32.mrf.mxu3 }
  0x8b   :  { %332 = vperm.xlu2 %2765, %v315_v39   ;;  %v205_v42 = vpop.f32.mrf.mxu1 }
  0x92   :  { %v317_v41 = vpop.f32.mrf.mxu3 }
  0x93   :  { %337 = vperm.xlu2 %2765, %v317_v41   ;;  %v207_v47 = vpop.f32.mrf.mxu1 }
  0x9a   :  { %v320_v43 = vpop.f32.mrf.mxu3 }
  0x9b   :  { %405 = vperm.xlu2 %2765, %v2859_v1   ;;  %342 = vperm.xlu1 %2764, %v320_v43   ;;  %v210_v55 = vpop.f32.mrf.mxu1 }
  0x9e   :  { %v181_v45 = vpop.f32.mrf.mxu0 }
  0x9f   :  { %v182_v49 = vadd.f32 %v181_v45, %v71_v46 }
  0xa1   :  { %v206_v51 = vadd.f32 %v205_v42, %v182_v49 }
  0xa2   :  { %v322_v48 = vpop.f32.mrf.mxu3 }
  0xa3   :  { %347 = vperm.xlu1 %2764, %v322_v48   ;;  %v220_v57 = vmax.f32 %v206_v51, 0.0  ;;  %v212_v63 = vpop.f32.mrf.mxu1 }
  0xa6   :  { %v183_v50 = vpop.f32.mrf.mxu0 }
  0xa7   :  { %v184_v52 = vadd.f32 %v183_v50, %v71_v46 }
  0xa9   :  { %v208_v53 = vadd.f32 %v207_v47, %v184_v52 }
  0xaa   :  { %v325_v54 = vpop.f32.mrf.mxu3 }
  0xab   :  { %352 = vperm.xlu0 %2763, %v325_v54   ;;  %2767 = vset.pattern.permute.xlu1 %v2799_v56  ;;  %v221_v58 = vmax.f32 %v208_v53, 0.0  ;;  %v215_v10 = vpop.f32.mrf.mxu1 }
  0xac   :  { %399 = vperm.xlu1 %2767, %v2864_v2  }
  0xad   :  { %v230_v59 = vpack.c.bf16 %v221_v58, %v220_v57  ;;  %v233_v58 = vperm.slane %v2968_v44, 1 }
  0xae   :  { %v186_v60 = vpop.f32.mrf.mxu0 }
  0xaf   :  { %704 = vrot.lane.b32.xlu2 %v230_v59, %s2800_s5  ;;  %2252 = vmatmul.msk.bf16.vlgmr.msra.gmra.mxu2 %vm246_vm3, %v230_v59  ;;  %v187_v62 = vadd.f32 %v186_v60, %v71_v46 }
  0xb1   :  { %v211_v3 = vadd.f32 %v210_v55, %v187_v62 }
  0xb2   :  { %v327_v61 = vpop.f32.mrf.mxu3 }
  0xb3   :  { %357 = vperm.xlu0 %2763, %v327_v61   ;;  %v222_v7 = vmax.f32 %v211_v3, 0.0  ;;  %v217_v15 = vpop.f32.mrf.mxu1 }
  0xb4   :  { %2768 = vset.pattern.permute.xlu1 %v2798_v37 }
  0xb5   :  { %409 = vperm.xlu1 %2768, %v2864_v2  }
  0xb6   :  { %v188_v0 = vpop.f32.mrf.mxu0 }
  0xb7   :  { %v189_v5 = vadd.f32 %v188_v0, %v71_v46  ;;  %2132 = vperm.xlu2 %2765, %v2968_v44  }
  0xb9   :  { %v213_v6 = vadd.f32 %v212_v63, %v189_v5 }
  0xbb   :  { %2766 = vset.pattern.permute.xlu0 %v2799_v56  ;;  %v223_v8 = vmax.f32 %v213_v6, 0.0 }
  0xbc   :  { %394 = vperm.xlu0 %2766, %v2859_v1   ;;  %v447_v1 = vlaneseq }
  0xbd   :  { %v231_v9 = vpack.c.bf16 %v223_v8, %v222_v7 }
  0xbe   :  { %v191_v11 = vpop.f32.mrf.mxu0  ;;  %v2981_v21 = vshrl.u32 %v447_v1, 7  ;;  %v2983_v22 = vand.u32 127, %v447_v1 }
  0xbf   :  { %2253 = vmatmul.msk.bf16.gmra.mxu2 %vm246_vm3, %v231_v9  ;;  %v192_v12 = vadd.f32 %v191_v11, %v71_v46 }
  0xc0   :  { %v2986_v23 = vadd.s32 16, %v2981_v21  ;;  %v2989_v24 = vadd.s32 24, %v2981_v21  ;;  %v2992_v25 = vadd.s32 8, %v2981_v21  ;;  %v3001_v29 = vmul.u32 32, %v2981_v21 }
  0xc1   :  { %v216_v13 = vadd.f32 %v215_v10, %v192_v12  ;;  %v3004_v30 = vadd.s32 256, %v2983_v22  ;;  %v3075_v47 = vadd.s32 768, %v2983_v22  ;;  %v3137_v63 = vadd.s32 128, %v2983_v22 }
  0xc2   :  { %v2995_v26 = vmul.u32 32, %v2986_v23  ;;  %v2998_v28 = vmul.u32 32, %v2989_v24  ;;  %v3007_v31 = vmul.u32 32, %v2992_v25  ;;  %v3024_v34 = vadd.s32 32, %v3001_v29 }
  0xc3   :  { %v224_v18 = vmax.f32 %v216_v13, 0.0  ;;  %vm465_vm1 = vcmp.ge.s32.totalorder %v2983_v22, %v3001_v29 }
  0xc4   :  { %706 = vrot.lane.b32.xlu0 %v231_v9, %s2800_s5  ;;  %vm481_vm4 = vcmp.ge.s32.totalorder %v2983_v22, %v2995_v26  ;;  %v3012_v32 = vadd.s32 32, %v2995_v26  ;;  %v3015_v33 = vadd.s32 32, %v2998_v28  ;;  %vm489_vm5 = vcmp.ge.s32.totalorder %v2983_v22, %v2998_v28 }
  0xc5   :  { %2769 = vset.pattern.permute.xlu0 %v2798_v37  ;;  %vm483_vm9 = vcmp.ge.s32.totalorder %v3004_v30, %v2995_v26  ;;  %v3031_v35 = vadd.s32 32, %v3007_v31  ;;  %vm491_vm12 = vcmp.ge.s32.totalorder %v3004_v30, %v2998_v28  ;;  %vm501_vm2 = vcmp.lt.s32.totalorder %v2983_v22, %v3024_v34 }
  0xc6   :  { %v193_v2 = vpop.f32.mrf.mxu0  ;;  %vm517_vm6 = vcmp.lt.s32.totalorder %v2983_v22, %v3012_v32  ;;  %vm525_vm7 = vcmp.lt.s32.totalorder %v2983_v22, %v3015_v33  ;;  %vm519_vm10 = vcmp.lt.s32.totalorder %v3004_v30, %v3012_v32  ;;  %vm527_vm13 = vcmp.lt.s32.totalorder %v3004_v30, %v3015_v33 }
  0xc7   :  { %v194_v14 = vadd.f32 %v193_v2, %v71_v46  ;;  %vm549_vm8 = vmand %vm481_vm4, %vm517_vm6  ;;  %vm509_vm6 = vcmp.lt.s32.totalorder %v2983_v22, %v3031_v35  ;;  %v3072_v46 = vadd.s32 512, %v2983_v22 }
  0xc8   :  { %vm557_vm11 = vmand %vm489_vm5, %vm525_vm7  ;;  %vm473_vm5 = vcmp.ge.s32.totalorder %v2983_v22, %v3007_v31 }
  0xc9   :  { %v218_v16 = vadd.f32 %v217_v15, %v194_v14  ;;  %vm2278_vm14 = vmpackc.low %vm557_vm11, %vm549_vm8 }
  0xca   :  { %2279 = vmatpush.bf16.msk.msrb.mxu2 %vm2278_vm14, %v2801_v36  ;;  %vm551_vm15 = vmand %vm483_vm9, %vm519_vm10  ;;  %vm467_vm9 = vcmp.ge.s32.totalorder %v3004_v30, %v3001_v29  ;;  %vm503_vm10 = vcmp.lt.s32.totalorder %v3004_v30, %v3024_v34 }
  0xcb   :  { %v225_v19 = vmax.f32 %v218_v16, 0.0  ;;  %vm559_vm4 = vmand %vm491_vm12, %vm527_vm13  ;;  %vm475_vm12 = vcmp.ge.s32.totalorder %v3004_v30, %v3007_v31  ;;  %vm511_vm13 = vcmp.lt.s32.totalorder %v3004_v30, %v3031_v35  ;;  %v2677_v16 = vld [vmem:[%s3762_s3] sm:$0xff] }
  0xcc   :  { %vm2292_vm7 = vmpackc.low %vm559_vm4, %vm551_vm15 }
  0xcd   :  { %v232_v20 = vpack.c.bf16 %v225_v19, %v224_v18  ;;  %2293 = vmatpush.bf16.msk.msrb.mxu0 %vm2292_vm7, %v2801_v36  ;;  %vm533_vm8 = vmand %vm465_vm1, %vm501_vm2  ;;  %vm485_vm2 = vcmp.ge.s32.totalorder %v3072_v46, %v2995_v26  ;;  %vm529_vm7 = vcmp.lt.s32.totalorder %v3072_v46, %v3015_v33  ;;  %v3187_v18 = vadd.s32 640, %v2983_v22 }
  0xce   :  { %vm541_vm11 = vmand %vm473_vm5, %vm509_vm6  ;;  %vm493_vm5 = vcmp.ge.s32.totalorder %v3072_v46, %v2998_v28  ;;  %vm521_vm6 = vcmp.lt.s32.totalorder %v3072_v46, %v3012_v32 }
  0xcf   :  { %708 = vrot.lane.b32.xlu1 %v232_v20, %s2800_s5  ;;  %2254 = vmatmul.msk.bf16.gmra.mxu2 %vm246_vm3, %v232_v20  ;;  %vm2280_vm14 = vmpackc.low %vm541_vm11, %vm533_vm8  ;;  %v412_v20 = vperm.slane %v2968_v44, 2 }
  0xd0   :  { %2281 = vmatpush.bf16.msk.msrb.mxu2 %vm2280_vm14, %v2801_v36  ;;  %vm535_vm15 = vmand %vm467_vm9, %vm503_vm10  ;;  %vm487_vm9 = vcmp.ge.s32.totalorder %v3075_v47, %v2995_v26  ;;  %vm523_vm10 = vcmp.lt.s32.totalorder %v3075_v47, %v3012_v32 }
  0xd1   :  { %vm543_vm4 = vmand %vm475_vm12, %vm511_vm13  ;;  %vm495_vm12 = vcmp.ge.s32.totalorder %v3075_v47, %v2998_v28  ;;  %vm531_vm13 = vcmp.lt.s32.totalorder %v3075_v47, %v3015_v33 }
  0xd2   :  { %vm2294_vm1 = vmpackc.low %vm543_vm4, %vm535_vm15  ;;  %vm469_vm4 = vcmp.ge.s32.totalorder %v3072_v46, %v3001_v29 }
  0xd3   :  { %2295 = vmatpush.bf16.msk.msrb.mxu0 %vm2294_vm1, %v2801_v36  ;;  %vm553_vm8 = vmand %vm485_vm2, %vm521_vm6  ;;  %vm505_vm1 = vcmp.lt.s32.totalorder %v3072_v46, %v3024_v34  ;;  %vm513_vm6 = vcmp.lt.s32.totalorder %v3072_v46, %v3031_v35 }
  0xd4   :  { %vm561_vm11 = vmand %vm493_vm5, %vm529_vm7  ;;  %vm477_vm5 = vcmp.ge.s32.totalorder %v3072_v46, %v3007_v31 }
  0xd5   :  { %vm2306_vm14 = vmpackc.low %vm561_vm11, %vm553_vm8 }
  0xd6   :  { %2307 = vmatpush.bf16.msk.msra.mxu2 %vm2306_vm14, %v2801_v36  ;;  %vm555_vm15 = vmand %vm487_vm9, %vm523_vm10  ;;  %vm471_vm9 = vcmp.ge.s32.totalorder %v3075_v47, %v3001_v29  ;;  %vm507_vm10 = vcmp.lt.s32.totalorder %v3075_v47, %v3024_v34 }
  0xd7   :  { %vm563_vm2 = vmand %vm495_vm12, %vm531_vm13  ;;  %vm479_vm12 = vcmp.ge.s32.totalorder %v3075_v47, %v3007_v31  ;;  %vm515_vm13 = vcmp.lt.s32.totalorder %v3075_v47, %v3031_v35 }
  0xd8   :  { %vm2320_vm7 = vmpackc.low %vm563_vm2, %vm555_vm15  ;;  %vm482_vm2 = vcmp.ge.s32.totalorder %v3137_v63, %v2995_v26 }
  0xd9   :  { %2321 = vmatpush.bf16.msk.msra.mxu0 %vm2320_vm7, %v2801_v36  ;;  %vm537_vm8 = vmand %vm469_vm4, %vm505_vm1  ;;  %vm526_vm7 = vcmp.lt.s32.totalorder %v3137_v63, %v3015_v33 }
  0xda   :  { %vm545_vm11 = vmand %vm477_vm5, %vm513_vm6  ;;  %vm518_vm5 = vcmp.lt.s32.totalorder %v3137_v63, %v3012_v32  ;;  %vm490_vm6 = vcmp.ge.s32.totalorder %v3137_v63, %v2998_v28 }
  0xdb   :  { %vm2308_vm14 = vmpackc.low %vm545_vm11, %vm537_vm8  ;;  %vm502_vm11 = vcmp.lt.s32.totalorder %v3137_v63, %v3024_v34 }
  0xdc   :  { %vm539_vm15 = vmand %vm471_vm9, %vm507_vm10  ;;  %2309 = vmatpush.bf16.msk.msra.mxu2 %vm2308_vm14, %v2801_v36  ;;  %vm466_vm10 = vcmp.ge.s32.totalorder %v3137_v63, %v3001_v29 }
  0xdd   :  { %vm547_vm4 = vmand %vm479_vm12, %vm515_vm13  ;;  %vm474_vm12 = vcmp.ge.s32.totalorder %v3137_v63, %v3007_v31  ;;  %vm510_vm13 = vcmp.lt.s32.totalorder %v3137_v63, %v3031_v35 }
  0xde   :  { %vm2322_vm1 = vmpackc.low %vm547_vm4, %vm539_vm15 }
  0xdf   :  { %2323 = vmatpush.bf16.msk.msra.mxu0 %vm2322_vm1, %v2801_v36  ;;  %vm3148_vm8 = vmand %vm482_vm2, %vm518_vm5  ;;  %vm3769_vm1 = vcmask 392192   ;;  %vm486_vm5 = vcmp.ge.s32.totalorder %v3187_v18, %v2995_v26 }
  0xe0   :  { %vm3153_vm9 = vmand %vm490_vm6, %vm526_vm7  ;;  %vm494_vm6 = vcmp.ge.s32.totalorder %v3187_v18, %v2998_v28  ;;  %vm522_vm7 = vcmp.lt.s32.totalorder %v3187_v18, %v3012_v32 }
  0xe1   :  { %vm2285_vm14 = vmpackc.low %vm3153_vm9, %vm3148_vm8  ;;  %vm530_vm8 = vcmp.lt.s32.totalorder %v3187_v18, %v3015_v33 }
  0xe2   :  { %vm534_vm15 = vmand %vm466_vm10, %vm502_vm11  ;;  %vm470_vm10 = vcmp.ge.s32.totalorder %v3187_v18, %v3001_v29  ;;  %vm506_vm11 = vcmp.lt.s32.totalorder %v3187_v18, %v3024_v34 }
  0xe3   :  { %vm542_vm4 = vmand %vm474_vm12, %vm510_vm13  ;;  %vm478_vm13 = vcmp.ge.s32.totalorder %v3187_v18, %v3007_v31 }
  0xe4   :  { %vm2287_vm2 = vmpackc.low %vm542_vm4, %vm534_vm15 }
  0xe5   :  { %v3056_v37 = vpop.permute.xlu2 %332  ;;  %vm554_vm9 = vmand %vm486_vm5, %vm522_vm7 }
  0xe6   :  { %vm562_vm12 = vmand %vm494_vm6, %vm530_vm8 }
  0xe7   :  { %vm2313_vm15 = vmpackc.low %vm562_vm12, %vm554_vm9 }
  0xe8   :  { %vm538_vm4 = vmand %vm470_vm10, %vm506_vm11 }
  0xed   :  { %v3059_v38 = vpop.permute.xlu2 %337 }
  0xf5   :  { %v3061_v39 = vpop.permute.xlu2 %405 }
 0x109   :  { %v3063_v40 = vpop.permute.xlu2 %704 }
 0x10a   :  { %2282 = vmatmul.msk.bf16.vlgmr.msrb.gmra.mxu2 %vm246_vm3, %v3063_v40  ;;  %2296 = vmatmul.msk.bf16.vlgmr.msrb.gmra.mxu0 %vm246_vm3, %v3063_v40 }
 0x10d   :  { %v3069_v42 = vpop.permute.xlu1 %342 }
 0x115   :  { %v348_v45 = vpop.permute.xlu1 %347 }
 0x11d   :  { %v353_v41 = vpop.permute.xlu0 %352 }
 0x11e   :  { %v3100_v49 = vpop.permute.xlu1 %399 }
 0x11f   :  { %3775 = vst [vmem:[#allocation6_spill] sm:$0xff] %v3100_v49 }
 0x125   :  { %v358_v43 = vpop.permute.xlu0 %357 }
 0x127   :  { %v3123_v53 = vpop.permute.xlu1 %409 }
 0x12e   :  { %v3085_v48 = vpop.permute.xlu0 %394 }
 0x12f   :  { %3774 = vst [vmem:[#allocation5_spill] sm:$0xff] %v3085_v48 }
 0x132   :  { %v265_v50 = vpop.f32.mrf.mxu2 }
 0x133   :  { %v266_v9 = vadd.f32 %v265_v50, %v233_v58 }
 0x135   :  { %v360_v14 = vmul.f32 %v3056_v37, %v266_v9  ;;  %v413_v37 = vmul.f32 %v412_v20, %v3061_v39  ;;  %v451_v39 = vadd.s32 384, %v2983_v22 }
 0x136   :  { %v3115_v51 = vpop.permute.xlu0 %706 }
 0x137   :  { %2283 = vmatmul.msk.bf16.gmra.mxu2 %vm246_vm3, %v3115_v51  ;;  %2297 = vmatmul.msk.bf16.gmra.mxu0 %vm246_vm3, %v3115_v51  ;;  %vm492_vm5 = vcmp.ge.s32.totalorder %v451_v39, %v2998_v28  ;;  %vm520_vm6 = vcmp.lt.s32.totalorder %v451_v39, %v3012_v32  ;;  %vm528_vm7 = vcmp.lt.s32.totalorder %v451_v39, %v3015_v33 }
 0x138   :  { %vm560_vm9 = vmand %vm492_vm5, %vm528_vm7  ;;  %vm468_vm11 = vcmp.ge.s32.totalorder %v451_v39, %v3001_v29  ;;  %vm476_vm12 = vcmp.ge.s32.totalorder %v451_v39, %v3007_v31 }
 0x13a   :  { %v267_v52 = vpop.f32.mrf.mxu2 }
 0x13b   :  { %v268_v6 = vadd.f32 %v267_v52, %v233_v58 }
 0x13d   :  { %v361_v2 = vmul.f32 %v3059_v38, %v268_v6  ;;  %v414_v38 = vmul.f32 %v412_v20, %v3123_v53 }
 0x13f   :  { %v366_v15 = vpack.c.bf16 %v361_v2, %v360_v14 }
 0x141   :  { %v3125_v55 = vpop.permute.xlu1 %708 }
 0x142   :  { %v270_v54 = vpop.f32.mrf.mxu2 }
 0x143   :  { %v271_v0 = vadd.f32 %v270_v54, %v233_v58 }
 0x145   :  { %v362_v10 = vmul.f32 %v3069_v42, %v271_v0  ;;  %v417_v42 = vperm.slane %v2968_v44, 3  ;;  %v615_v44 = vand.u32 31, %v3004_v30 }
 0x147   :  { %2284 = vmatmul.msk.bf16.gmra.mxu2 %vm246_vm3, %v3125_v55  ;;  %2298 = vmatmul.msk.bf16.gmra.mxu0 %vm246_vm3, %v3125_v55 }
 0x14a   :  { %v272_v56 = vpop.f32.mrf.mxu2 }
 0x14b   :  { %v273_v61 = vadd.f32 %v272_v56, %v233_v58 }
 0x14d   :  { %v363_v8 = vmul.f32 %v348_v45, %v273_v61 }
 0x14f   :  { %v367_v12 = vpack.c.bf16 %v363_v8, %v362_v10 }
 0x152   :  { %v275_v57 = vpop.f32.mrf.mxu2 }
 0x153   :  { %v276_v59 = vadd.f32 %v275_v57, %v233_v58 }
 0x155   :  { %v364_v3 = vmul.f32 %v353_v41, %v276_v59 }
 0x157   :  { %2310 = vmatmul.msk.bf16.vlgmr.msra.gmra.mxu2 %vm246_vm3, %v3063_v40  ;;  %2324 = vmatmul.msk.bf16.vlgmr.msra.gmra.mxu0 %vm246_vm3, %v3063_v40 }
 0x15a   :  { %v277_v60 = vpop.f32.mrf.mxu2 }
 0x15b   :  { %v278_v62 = vadd.f32 %v277_v60, %v233_v58 }
 0x15d   :  { %v365_v5 = vmul.f32 %v358_v43, %v278_v62 }
 0x15f   :  { %v368_v7 = vpack.c.bf16 %v365_v5, %v364_v3 }
 0x161   :  { %383 = vmatpush.bf16.msrb.mxu3 %v368_v7 }
 0x165   :  { %384 = vmatpush.bf16.msrb.mxu3 %v367_v12 }
 0x167   :  { %2311 = vmatmul.msk.bf16.gmra.mxu2 %vm246_vm3, %v3115_v51  ;;  %2325 = vmatmul.msk.bf16.gmra.mxu0 %vm246_vm3, %v3115_v51 }
 0x169   :  { %385 = vmatpush.bf16.msrb.mxu3 %v366_v15 }
 0x16c   :  { %2274 = vmatmul.msk.bf16.vlgmr.msrb.gmra.mxu3 %vm3769_vm1, %v2677_v16 }
 0x16d   :  { %2286 = vmatpush.bf16.msk.msra.mxu3 %vm2285_vm14, %v2801_v36  ;;  %vm514_vm14 = vcmp.lt.s32.totalorder %v3187_v18, %v3031_v35 }
 0x171   :  { %2288 = vmatpush.bf16.msk.msra.mxu3 %vm2287_vm2, %v2801_v36  ;;  %vm546_vm2 = vmand %vm478_vm13, %vm514_vm14  ;;  %vm504_vm13 = vcmp.lt.s32.totalorder %v451_v39, %v3024_v34  ;;  %vm512_vm14 = vcmp.lt.s32.totalorder %v451_v39, %v3031_v35 }
 0x172   :  { %vm2315_vm1 = vmpackc.low %vm546_vm2, %vm538_vm4 }
 0x173   :  { %vm544_vm4 = vmand %vm476_vm12, %vm512_vm14 }
 0x175   :  { %2314 = vmatpush.bf16.msk.msrb.mxu3 %vm2313_vm15, %v2801_v36  ;;  %vm536_vm15 = vmand %vm468_vm11, %vm504_vm13 }
 0x176   :  { %vm2301_vm2 = vmpackc.low %vm544_vm4, %vm536_vm15 }
 0x177   :  { %2312 = vmatmul.msk.bf16.gmra.mxu2 %vm246_vm3, %v3125_v55  ;;  %2326 = vmatmul.msk.bf16.gmra.mxu0 %vm246_vm3, %v3125_v55 }
 0x179   :  { %2316 = vmatpush.bf16.msk.msrb.mxu3 %vm2315_vm1, %v2801_v36  ;;  %vm484_vm1 = vcmp.ge.s32.totalorder %v451_v39, %v2995_v26 }
 0x17a   :  { %vm552_vm8 = vmand %vm484_vm1, %vm520_vm6 }
 0x17b   :  { %vm2299_vm10 = vmpackc.low %vm560_vm9, %vm552_vm8 }
 0x17c   :  { %2289 = vmatmul.msk.bf16.vlgmr.msra.gmra.mxu3 %vm246_vm3, %v3063_v40 }
 0x18c   :  { %2290 = vmatmul.msk.bf16.gmra.mxu3 %vm246_vm3, %v3115_v51 }
 0x19c   :  { %2291 = vmatmul.msk.bf16.gmra.mxu3 %vm246_vm3, %v3125_v55 }
 0x1ac   :  { %2317 = vmatmul.msk.bf16.vlgmr.msrb.gmra.mxu3 %vm246_vm3, %v3063_v40 }
 0x1bc   :  { %2318 = vmatmul.msk.bf16.gmra.mxu3 %vm246_vm3, %v3115_v51 }
 0x1cc   :  { %2319 = vmatmul.msk.bf16.gmra.mxu3 %vm246_vm3, %v3125_v55 }
 0x1ef   :  { %v387_v19 = vpop.f32.mrf.mxu3 }
 0x1f0   :  { %v402_v1 = vmul.f32 %v3085_v48, %v387_v19 }
 0x1f2   :  { %v415_v41 = vadd.f32 %v413_v37, %v402_v1 }
 0x1f4   :  { %v418_v52 = vadd.f32 %v417_v42, %v415_v41 }
 0x1f6   :  { %v420_v56 = vmax.f32 %v418_v52, 0.0 }
 0x1f7   :  { %v389_v43 = vpop.f32.mrf.mxu3 }
 0x1f8   :  { %v403_v45 = vmul.f32 %v3100_v49, %v389_v43  ;;  %v2744_v49 = vld [vmem:[%s3765_s6 + $0x1b0] sm:$0xff] }
 0x1fa   :  { %v416_v50 = vadd.f32 %v414_v38, %v403_v45 }
 0x1fc   :  { %v419_v54 = vadd.f32 %v417_v42, %v416_v50 }
 0x1fe   :  { %v421_v57 = vmax.f32 %v419_v54, 0.0 }
 0x1ff   :  { %v3338_v62 = vpop.f32.mrf.mxu3 }
 0x200   :  { %v3223_v58 = vpack.c.bf16 %v421_v57, %v420_v56  ;;  %v2713_v57 = vld [vmem:[%s3765_s6 + $0xb8] sm:$0xff] }
 0x202   :  { %430 = vmatpush.bf16.msrb.mxu1 %v3223_v58 }
 0x205   :  { %2275 = vmatmul.msk.bf16.vlgmr.msrb.gmra.mxu1 %vm296_vm0, %v2871_v4  ;;  %v3246_v4 = vadd.s32 896, %v2983_v22 }
 0x206   :  { %2300 = vmatpush.bf16.msk.msra.mxu1 %vm2299_vm10, %v2801_v36 }
 0x207   :  { %vm488_vm1 = vcmp.ge.s32.totalorder %v3246_v4, %v2995_v26  ;;  %vm496_vm5 = vcmp.ge.s32.totalorder %v3246_v4, %v2998_v28  ;;  %vm524_vm6 = vcmp.lt.s32.totalorder %v3246_v4, %v3012_v32  ;;  %vm532_vm7 = vcmp.lt.s32.totalorder %v3246_v4, %v3015_v33  ;;  %v3363_v3 = vpop.f32.mrf.mxu3 }
 0x208   :  { %vm556_vm8 = vmand %vm488_vm1, %vm524_vm6  ;;  %vm508_vm9 = vcmp.lt.s32.totalorder %v3246_v4, %v3024_v34  ;;  %vm480_vm11 = vcmp.ge.s32.totalorder %v3246_v4, %v3007_v31  ;;  %vm516_vm12 = vcmp.lt.s32.totalorder %v3246_v4, %v3031_v35  ;;  %v617_v35 = vand.u32 31, %v3072_v46  ;;  %v3324_v46 = vpop.f32.mrf.mxu0 }
 0x209   :  { %vm564_vm10 = vmand %vm496_vm5, %vm532_vm7  ;;  %v620_v59 = vand.u32 31, %v3246_v4 }
 0x20a   :  { %2302 = vmatpush.bf16.msk.msra.mxu1 %vm2301_vm2, %v2801_v36  ;;  %vm2327_vm13 = vmpackc.low %vm564_vm10, %vm556_vm8  ;;  %vm639_vm8 = vcmp.eq.s32.totalorder %v615_v44, %v2986_v23 }
 0x20b   :  { %vm548_vm15 = vmand %vm480_vm11, %vm516_vm12 }
 0x20e   :  { %2328 = vmatpush.bf16.msk.msrb.mxu1 %vm2327_vm13, %v2801_v36 }
 0x215   :  { %2276 = vmatmul.msk.bf16.gmra.mxu1 %vm296_vm0, %v2906_v17  ;;  %v613_v17 = vand.u32 31, %v2983_v22  ;;  %v616_v22 = vand.u32 31, %v451_v39  ;;  %v2721_v39 = vld [vmem:[%s3765_s6 + $0xf8] sm:$0xff] }
 0x217   :  { %vm637_vm2 = vcmp.eq.s32.totalorder %v613_v17, %v2986_v23  ;;  %vm645_vm1 = vcmp.eq.s32.totalorder %v613_v17, %v2989_v24  ;;  %vm621_vm11 = vcmp.eq.s32.totalorder %v613_v17, %v2981_v21  ;;  %vm629_vm12 = vcmp.eq.s32.totalorder %v613_v17, %v2992_v25 }
 0x218   :  { %vm2334_vm7 = vmpackc.low %vm645_vm1, %vm637_vm2  ;;  %vm631_vm2 = vcmp.eq.s32.totalorder %v615_v44, %v2992_v25  ;;  %vm640_vm1 = vcmp.eq.s32.totalorder %v616_v22, %v2986_v23 }
 0x219   :  { %2335 = vmatpush.bf16.msk.msrb.mxu2 %vm2334_vm7, %v2801_v36 }
 0x225   :  { %2277 = vmatmul.msk.bf16.gmra.mxu1 %vm296_vm0, %v2935_v27  ;;  %vm472_vm0 = vcmp.ge.s32.totalorder %v3246_v4, %v3001_v29  ;;  %v614_v27 = vand.u32 31, %v3137_v63  ;;  %v3342_v63 = vpop.f32.mrf.mxu2  ;;  %v2697_v4 = vld [vmem:[%s3765_s6 + $0x38] sm:$0xff] }
 0x226   :  { %vm540_vm14 = vmand %vm472_vm0, %vm508_vm9  ;;  %vm647_vm0 = vcmp.eq.s32.totalorder %v615_v44, %v2989_v24 }
 0x227   :  { %vm2329_vm4 = vmpackc.low %vm548_vm15, %vm540_vm14  ;;  %vm638_vm5 = vcmp.eq.s32.totalorder %v614_v27, %v2986_v23  ;;  %vm646_vm6 = vcmp.eq.s32.totalorder %v614_v27, %v2989_v24  ;;  %vm622_vm13 = vcmp.eq.s32.totalorder %v614_v27, %v2981_v21  ;;  %vm630_vm14 = vcmp.eq.s32.totalorder %v614_v27, %v2992_v25  ;;  %v2705_v27 = vld [vmem:[%s3765_s6 + $0x78] sm:$0xff] }
 0x228   :  { %2330 = vmatpush.bf16.msk.msrb.mxu1 %vm2329_vm4, %v2801_v36  ;;  %vm2341_vm9 = vmpackc.low %vm646_vm6, %vm638_vm5  ;;  %vm623_vm4 = vcmp.eq.s32.totalorder %v615_v44, %v2981_v21  ;;  %vm648_vm5 = vcmp.eq.s32.totalorder %v616_v22, %v2989_v24 }
 0x229   :  { %2342 = vmatpush.bf16.msk.msra.mxu3 %vm2341_vm9, %v2801_v36  ;;  %vm2348_vm10 = vmpackc.low %vm647_vm0, %vm639_vm8  ;;  %vm624_vm0 = vcmp.eq.s32.totalorder %v616_v22, %v2981_v21  ;;  %vm632_vm9 = vcmp.eq.s32.totalorder %v616_v22, %v2992_v25  ;;  %v2712_v22 = vld [vmem:[%s3765_s6 + $0xb0] sm:$0xff] }
 0x22a   :  { %2349 = vmatpush.bf16.msk.msrb.mxu0 %vm2348_vm10, %v2801_v36  ;;  %vm2336_vm15 = vmpackc.low %vm629_vm12, %vm621_vm11  ;;  %vm641_vm11 = vcmp.eq.s32.totalorder %v617_v35, %v2986_v23  ;;  %vm649_vm12 = vcmp.eq.s32.totalorder %v617_v35, %v2989_v24 }
 0x22b   :  { %2337 = vmatpush.bf16.msk.msrb.mxu2 %vm2336_vm15, %v2801_v36  ;;  %vm2343_vm6 = vmpackc.low %vm630_vm14, %vm622_vm13 }
 0x22c   :  { %vm2350_vm7 = vmpackc.low %vm631_vm2, %vm623_vm4 }
 0x22d   :  { %2344 = vmatpush.bf16.msk.msra.mxu3 %vm2343_vm6, %v2801_v36  ;;  %vm2355_vm8 = vmpackc.low %vm648_vm5, %vm640_vm1  ;;  %vm625_vm1 = vcmp.eq.s32.totalorder %v617_v35, %v2981_v21  ;;  %vm633_vm5 = vcmp.eq.s32.totalorder %v617_v35, %v2992_v25 }
 0x22e   :  { %2351 = vmatpush.bf16.msk.msrb.mxu0 %vm2350_vm7, %v2801_v36  ;;  %vm2357_vm10 = vmpackc.low %vm632_vm9, %vm624_vm0 }
 0x22f   :  { %vm2362_vm15 = vmpackc.low %vm649_vm12, %vm641_vm11 }
 0x230   :  { %2363 = vmatpush.bf16.msk.msra.mxu2 %vm2362_vm15, %v2801_v36  ;;  %vm2364_vm11 = vmpackc.low %vm633_vm5, %vm625_vm1  ;;  %vm636_vm1 = vcmp.eq.s32.totalorder %v620_v59, %v2992_v25 }
 0x234   :  { %2365 = vmatpush.bf16.msk.msra.mxu2 %vm2364_vm11, %v2801_v36 }
 0x235   :  { %2303 = vmatmul.msk.bf16.vlgmr.msra.gmra.mxu1 %vm246_vm3, %v3063_v40 }
 0x236   :  { %2356 = vmatpush.bf16.msk.msra.mxu1 %vm2355_vm8, %v2801_v36 }
 0x23a   :  { %2358 = vmatpush.bf16.msk.msra.mxu1 %vm2357_vm10, %v2801_v36 }
 0x245   :  { %2304 = vmatmul.msk.bf16.gmra.mxu1 %vm246_vm3, %v3115_v51 }
 0x255   :  { %2305 = vmatmul.msk.bf16.gmra.mxu1 %vm246_vm3, %v3125_v55 }
 0x265   :  { %2331 = vmatmul.msk.bf16.vlgmr.msrb.gmra.mxu1 %vm246_vm3, %v3063_v40  ;;  %v618_v40 = vand.u32 31, %v3187_v18 }
 0x267   :  { %vm642_vm13 = vcmp.eq.s32.totalorder %v618_v40, %v2986_v23  ;;  %vm650_vm14 = vcmp.eq.s32.totalorder %v618_v40, %v2989_v24  ;;  %vm626_vm7 = vcmp.eq.s32.totalorder %v618_v40, %v2981_v21  ;;  %vm634_vm8 = vcmp.eq.s32.totalorder %v618_v40, %v2992_v25  ;;  %v2695_v40 = vld [vmem:[%s3765_s6 + $0x28] sm:$0xff] }
 0x268   :  { %vm2369_vm6 = vmpackc.low %vm650_vm14, %vm642_vm13  ;;  %vm644_vm13 = vcmp.eq.s32.totalorder %v620_v59, %v2986_v23  ;;  %vm652_vm14 = vcmp.eq.s32.totalorder %v620_v59, %v2989_v24 }
 0x269   :  { %2370 = vmatpush.bf16.msk.msrb.mxu3 %vm2369_vm6, %v2801_v36  ;;  %vm2371_vm12 = vmpackc.low %vm634_vm8, %vm626_vm7  ;;  %vm3784_vm6 = vcmask 392192   ;;  %vm2159_vm7 = vcmask 122880  }
 0x26d   :  { %2372 = vmatpush.bf16.msk.msrb.mxu3 %vm2371_vm12, %v2801_v36 }
 0x275   :  { %2332 = vmatmul.msk.bf16.gmra.mxu1 %vm246_vm3, %v3115_v51  ;;  %v619_v51 = vand.u32 31, %v3075_v47 }
 0x277   :  { %vm643_vm4 = vcmp.eq.s32.totalorder %v619_v51, %v2986_v23  ;;  %vm651_vm2 = vcmp.eq.s32.totalorder %v619_v51, %v2989_v24  ;;  %vm627_vm9 = vcmp.eq.s32.totalorder %v619_v51, %v2981_v21  ;;  %vm635_vm10 = vcmp.eq.s32.totalorder %v619_v51, %v2992_v25  ;;  %v3358_v24 = vpop.f32.mrf.mxu0  ;;  %v2703_v51 = vld [vmem:[%s3765_s6 + $0x68] sm:$0xff] }
 0x278   :  { %vm2376_vm0 = vmpackc.low %vm651_vm2, %vm643_vm4  ;;  %vm628_vm2 = vcmp.eq.s32.totalorder %v620_v59, %v2981_v21  ;;  %v3365_v21 = vpop.f32.mrf.mxu2  ;;  %v2694_v59 = vld [vmem:[%s3765_s6 + $0x20] sm:$0xff] }
 0x279   :  { %2377 = vmatpush.bf16.msk.msra.mxu0 %vm2376_vm0, %v2801_v36  ;;  %vm2378_vm15 = vmpackc.low %vm635_vm10, %vm627_vm9 }
 0x27a   :  { %vm2383_vm4 = vmpackc.low %vm652_vm14, %vm644_vm13 }
 0x27b   :  { %2384 = vmatpush.bf16.msk.msrb.mxu1 %vm2383_vm4, %v2801_v36  ;;  %vm2385_vm5 = vmpackc.low %vm636_vm1, %vm628_vm2 }
 0x27d   :  { %2379 = vmatpush.bf16.msk.msra.mxu0 %vm2378_vm15, %v2801_v36 }
 0x27f   :  { %2386 = vmatpush.bf16.msk.msrb.mxu1 %vm2385_vm5, %v2801_v36  ;;  %v3367_v7 = vpop.f32.mrf.mxu0  ;;  %v3377_v36 = vpop.f32.mrf.mxu3 }
 0x280   :  { %v3371_v11 = vpop.f32.mrf.mxu2 }
 0x282   :  { %v432_v26 = vpop.f32.mrf.mxu1 }
 0x283   :  { %v911_v28 = vpack.c.bf16 %v432_v26, %v432_v26  ;;  %v2720_v26 = vld [vmem:[%s3765_s6 + $0xf0] sm:$0xff] }
 0x285   :  { %2333 = vmatmul.msk.bf16.gmra.mxu1 %vm246_vm3, %v3125_v55  ;;  %v923_v31 = vunpack.c.l.b16 %v911_v28 }
 0x287   :  { %v3385_v2 = vpop.f32.mrf.mxu0  ;;  %v3391_v15 = vpop.f32.mrf.mxu3 }
 0x288   :  { %v3389_v14 = vpop.f32.mrf.mxu2 }
 0x28a   :  { %v434_v29 = vpop.f32.mrf.mxu1 }
 0x28b   :  { %v912_v30 = vpack.c.bf16 %v434_v29, %v434_v29  ;;  %v2696_v29 = vld [vmem:[%s3765_s6 + $0x30] sm:$0xff] }
 0x28d   :  { %v924_v32 = vunpack.c.l.b16 %v912_v30  ;;  %v2704_v30 = vld [vmem:[%s3765_s6 + $0x70] sm:$0xff] }
 0x28f   :  { %v3303_v33 = vpack.c.b16 %v924_v32, %v923_v31  ;;  %v3393_v16 = vpop.f32.mrf.mxu0  ;;  %v3407_v20 = vpop.f32.mrf.mxu3  ;;  %v2711_v32 = vld [vmem:[%s3765_s6 + $0xa8] sm:$0xff] }
 0x290   :  { %v3403_v19 = vpop.f32.mrf.mxu2 }
 0x291   :  { %2338 = vmatmul.msk.bf16.vlgmr.msrb.gmra.mxu2 %vm246_vm3, %v3303_v33  ;;  %2345 = vmatmul.msk.bf16.vlgmr.msra.gmra.mxu3 %vm246_vm3, %v3303_v33 }
 0x292   :  { %2352 = vmatmul.msk.bf16.vlgmr.msrb.gmra.mxu0 %vm246_vm3, %v3303_v33  ;;  %v437_v34 = vpop.f32.mrf.mxu1  ;;  %1853 = vmatpush.bf16.msrb.mxu2 %v2697_v4 }
 0x293   :  { %v913_v53 = vpack.c.bf16 %v437_v34, %v437_v34  ;;  %1901 = vmatpush.bf16.msrb.mxu0 %v2713_v57  ;;  %1877 = vmatpush.bf16.msra.mxu3 %v2705_v27  ;;  %v2719_v34 = vld [vmem:[%s3765_s6 + $0xe8] sm:$0xff]  ;;  %v2708_v57 = vld [vmem:[%s3765_s6 + $0x90] sm:$0xff] }
 0x294   :  { %v2692_v27 = vld [vmem:[%s3765_s6 + $0x10] sm:$0xff] }
 0x295   :  { %2359 = vmatmul.msk.bf16.vlgmr.msra.gmra.mxu1 %vm246_vm3, %v3303_v33  ;;  %v925_v60 = vunpack.c.l.b16 %v913_v53 }
 0x296   :  { %1925 = vmatpush.bf16.msra.mxu1 %v2721_v39  ;;  %1854 = vmatpush.bf16.msrb.mxu2 %v2696_v29  ;;  %v2716_v39 = vld [vmem:[%s3765_s6 + $0xd0] sm:$0xff]  ;;  %v2707_v29 = vld [vmem:[%s3765_s6 + $0x88] sm:$0xff] }
 0x297   :  { %v3411_v37 = vpop.f32.mrf.mxu0  ;;  %v3415_v41 = vpop.f32.mrf.mxu3  ;;  %1902 = vmatpush.bf16.msrb.mxu0 %v2712_v22  ;;  %1878 = vmatpush.bf16.msra.mxu3 %v2704_v30  ;;  %v2700_v22 = vld [vmem:[%s3765_s6 + $0x50] sm:$0xff]  ;;  %v2715_v30 = vld [vmem:[%s3765_s6 + $0xc8] sm:$0xff] }
 0x298   :  { %v3413_v38 = vpop.f32.mrf.mxu2 }
 0x29a   :  { %v439_v55 = vpop.f32.mrf.mxu1  ;;  %1926 = vmatpush.bf16.msra.mxu1 %v2720_v26  ;;  %1855 = vmatpush.bf16.msrb.mxu2 %v2695_v40  ;;  %v2699_v40 = vld [vmem:[%s3765_s6 + $0x48] sm:$0xff] }
 0x29b   :  { %v914_v47 = vpack.c.bf16 %v439_v55, %v439_v55  ;;  %1903 = vmatpush.bf16.msrb.mxu0 %v2711_v32  ;;  %1879 = vmatpush.bf16.msra.mxu3 %v2703_v51  ;;  %v2710_v55 = vld [vmem:[%s3765_s6 + $0xa0] sm:$0xff] }
 0x29c   :  { %v2706_v51 = vld [vmem:[%s3765_s6 + $0x80] sm:$0xff] }
 0x29d   :  { %v926_v61 = vunpack.c.l.b16 %v914_v47  ;;  %v2718_v47 = vld [vmem:[%s3765_s6 + $0xe0] sm:$0xff] }
 0x29e   :  { %1927 = vmatpush.bf16.msra.mxu1 %v2719_v34  ;;  %1856 = vmatpush.bf16.msrb.mxu2 %v2694_v59  ;;  %v2691_v34 = vld [vmem:[%s3765_s6 + $0x8] sm:$0xff]  ;;  %v2690_v59 = vld [vmem:[%s3765_s6] sm:$0xff] }
 0x29f   :  { %v3344_v0 = vpack.c.b16 %v926_v61, %v925_v60  ;;  %v3425_v43 = vpop.f32.mrf.mxu0  ;;  %v3431_v50 = vpop.f32.mrf.mxu3  ;;  %1904 = vmatpush.bf16.msrb.mxu0 %v2710_v55  ;;  %v2702_v60 = vld [vmem:[%s3765_s6 + $0x60] sm:$0xff] }
 0x2a0   :  { %v3429_v45 = vpop.f32.mrf.mxu2  ;;  %1880 = vmatpush.bf16.msra.mxu3 %v2702_v60  ;;  %v2714_v55 = vld [vmem:[%s3765_s6 + $0xc0] sm:$0xff] }
 0x2a1   :  { %3780 = vst [vmem:[#allocation7_spill] sm:$0xff] %v3344_v0  ;;  %2339 = vmatmul.msk.bf16.gmra.mxu2 %vm246_vm3, %v3344_v0  ;;  %2346 = vmatmul.msk.bf16.gmra.mxu3 %vm246_vm3, %v3344_v0  ;;  %v2698_v60 = vld [vmem:[%s3765_s6 + $0x40] sm:$0xff] }
 0x2a2   :  { %2353 = vmatmul.msk.bf16.gmra.mxu0 %vm246_vm3, %v3344_v0  ;;  %v442_v23 = vpop.f32.mrf.mxu1  ;;  %1928 = vmatpush.bf16.msra.mxu1 %v2718_v47 }
 0x2a3   :  { %v915_v25 = vpack.c.bf16 %v442_v23, %v442_v23 }
 0x2a5   :  { %2360 = vmatmul.msk.bf16.gmra.mxu1 %vm246_vm3, %v3344_v0  ;;  %v927_v8 = vunpack.c.l.b16 %v915_v25  ;;  %v2709_v25 = vld [vmem:[%s3765_s6 + $0x98] sm:$0xff] }
 0x2a6   :  { %1905 = vmatpush.bf16.msrb.mxu0 %v2709_v25 }
 0x2a7   :  { %v3435_v54 = vpop.f32.mrf.mxu0  ;;  %v3459_v44 = vpop.f32.mrf.mxu3 }
 0x2a8   :  { %v3454_v17 = vpop.f32.mrf.mxu2 }
 0x2aa   :  { %v444_v5 = vpop.f32.mrf.mxu1  ;;  %1906 = vmatpush.bf16.msrb.mxu0 %v2708_v57 }
 0x2ab   :  { %v916_v6 = vpack.c.bf16 %v444_v5, %v444_v5  ;;  %v2717_v5 = vld [vmem:[%s3765_s6 + $0xd8] sm:$0xff] }
 0x2ac   :  { %1929 = vmatpush.bf16.msra.mxu1 %v2717_v5 }
 0x2ad   :  { %v928_v9 = vunpack.c.l.b16 %v916_v6  ;;  %v2693_v6 = vld [vmem:[%s3765_s6 + $0x18] sm:$0xff] }
 0x2ae   :  { %1857 = vmatpush.bf16.msrb.mxu2 %v2693_v6  ;;  %1907 = vmatpush.bf16.msrb.mxu0 %v2707_v29  ;;  %v2745_v29 = vld [vmem:[%s3765_s6 + $0x1b8] sm:$0xff] }
 0x2af   :  { %v3369_v10 = vpack.c.b16 %v928_v9, %v927_v8  ;;  %v3469_v28 = vpop.f32.mrf.mxu0  ;;  %v3493_v53 = vpop.f32.mrf.mxu3  ;;  %v2701_v8 = vld [vmem:[%s3765_s6 + $0x58] sm:$0xff] }
 0x2b0   :  { %v3485_v35 = vpop.f32.mrf.mxu2  ;;  %1881 = vmatpush.bf16.msra.mxu3 %v2701_v8  ;;  %1930 = vmatpush.bf16.msra.mxu1 %v2716_v39 }
 0x2b1   :  { %3781 = vst [vmem:[#allocation8_spill] sm:$0xff] %v3369_v10  ;;  %2340 = vmatmul.msk.bf16.gmra.mxu2 %vm246_vm3, %v3369_v10  ;;  %2347 = vmatmul.msk.bf16.gmra.mxu3 %vm246_vm3, %v3369_v10 }
 0x2b2   :  { %2354 = vmatmul.msk.bf16.gmra.mxu0 %vm246_vm3, %v3369_v10  ;;  %v3381_v12 = vpop.f32.mrf.mxu1  ;;  %1858 = vmatpush.bf16.msrb.mxu2 %v2692_v27 }
 0x2b3   :  { %1908 = vmatpush.bf16.msrb.mxu0 %v2706_v51  ;;  %v2729_v51 = vld [vmem:[%s3765_s6 + $0x138] sm:$0xff] }
 0x2b4   :  { %1882 = vmatpush.bf16.msra.mxu3 %v2700_v22  ;;  %1931 = vmatpush.bf16.msra.mxu1 %v2715_v30  ;;  %v2753_v30 = vld [vmem:[%s3765_s6 + $0x1f8] sm:$0xff] }
 0x2b5   :  { %2361 = vmatmul.msk.bf16.gmra.mxu1 %vm246_vm3, %v3369_v10 }
 0x2b6   :  { %1859 = vmatpush.bf16.msrb.mxu2 %v2691_v34 }
 0x2b7   :  { %v3509_v23 = vpop.f32.mrf.mxu0  ;;  %v3531_v4 = vpop.f32.mrf.mxu3 }
 0x2b8   :  { %v3523_v9 = vpop.f32.mrf.mxu2  ;;  %1883 = vmatpush.bf16.msra.mxu3 %v2699_v40  ;;  %1932 = vmatpush.bf16.msra.mxu1 %v2714_v55  ;;  %v2737_v55 = vld [vmem:[%s3765_s6 + $0x178] sm:$0xff] }
 0x2ba   :  { %v3387_v13 = vpop.f32.mrf.mxu1  ;;  %1860 = vmatpush.bf16.msrb.mxu2 %v2690_v59 }
 0x2bc   :  { %1884 = vmatpush.bf16.msra.mxu3 %v2698_v60 }
 0x2bf   :  { %v3547_v32 = vpop.f32.mrf.mxu0  ;;  %v3569_v25 = vpop.f32.mrf.mxu3 }
 0x2c0   :  { %v3561_v47 = vpop.f32.mrf.mxu2 }
 0x2c1   :  { %2366 = vmatmul.msk.bf16.vlgmr.msra.gmra.mxu2 %vm246_vm3, %v3303_v33  ;;  %2373 = vmatmul.msk.bf16.vlgmr.msrb.gmra.mxu3 %vm246_vm3, %v3303_v33 }
 0x2c2   :  { %2380 = vmatmul.msk.bf16.vlgmr.msra.gmra.mxu0 %vm246_vm3, %v3303_v33  ;;  %v3401_v18 = vpop.f32.mrf.mxu1  ;;  %1949 = vmatpush.bf16.msra.mxu2 %v2729_v51 }
 0x2c3   :  { %1997 = vmatpush.bf16.msra.mxu0 %v2745_v29  ;;  %1973 = vmatpush.bf16.msrb.mxu3 %v2737_v55  ;;  %v2752_v29 = vld [vmem:[%s3765_s6 + $0x1f0] sm:$0xff] }
 0x2c5   :  { %2387 = vmatmul.msk.bf16.vlgmr.msrb.gmra.mxu1 %vm246_vm3, %v3303_v33 }
 0x2c6   :  { %2021 = vmatpush.bf16.msrb.mxu1 %v2753_v30 }
 0x2c7   :  { %v3573_v6 = vpop.f32.mrf.mxu0  ;;  %v3579_v39 = vpop.f32.mrf.mxu3  ;;  %1998 = vmatpush.bf16.msra.mxu0 %v2744_v49  ;;  %v2743_v49 = vld [vmem:[%s3765_s6 + $0x1a8] sm:$0xff] }
 0x2c8   :  { %v3577_v57 = vpop.f32.mrf.mxu2 }
 0x2ca   :  { %v3409_v1 = vpop.f32.mrf.mxu1  ;;  %2022 = vmatpush.bf16.msrb.mxu1 %v2752_v29 }
 0x2cb   :  { %1999 = vmatpush.bf16.msra.mxu0 %v2743_v49 }
 0x2d1   :  { %2367 = vmatmul.msk.bf16.gmra.mxu2 %vm246_vm3, %v3344_v0  ;;  %2374 = vmatmul.msk.bf16.gmra.mxu3 %vm246_vm3, %v3344_v0 }
 0x2d2   :  { %2381 = vmatmul.msk.bf16.gmra.mxu0 %vm246_vm3, %v3344_v0  ;;  %v3423_v42 = vpop.f32.mrf.mxu1 }
 0x2d5   :  { %2388 = vmatmul.msk.bf16.gmra.mxu1 %vm246_vm3, %v3344_v0 }
 0x2da   :  { %v3433_v52 = vpop.f32.mrf.mxu1 }
 0x2e1   :  { %2368 = vmatmul.msk.bf16.gmra.mxu2 %vm246_vm3, %v3369_v10  ;;  %2375 = vmatmul.msk.bf16.gmra.mxu3 %vm246_vm3, %v3369_v10 }
 0x2e2   :  { %2382 = vmatmul.msk.bf16.gmra.mxu0 %vm246_vm3, %v3369_v10  ;;  %v3443_v56 = vpop.f32.mrf.mxu1 }
 0x2e5   :  { %2389 = vmatmul.msk.bf16.gmra.mxu1 %vm246_vm3, %v3369_v10 }
 0x2ea   :  { %v3477_v31 = vpop.f32.mrf.mxu1 }
 0x2f2   :  { %v3507_v61 = vpop.f32.mrf.mxu1 }
 0x2fa   :  { %v3539_v26 = vpop.f32.mrf.mxu1 }
 0x302   :  { %v3571_v5 = vpop.f32.mrf.mxu1 }
 0x30a   :  { %v3575_v8 = vpop.f32.mrf.mxu1 }
 0x30f   :  { %v998_v27 = vpop.f32.mrf.mxu0 }
 0x310   :  { %v1135_v30 = vmul.f32 %v998_v27, %v3324_v46 }
 0x312   :  { %v1022_v22 = vpop.f32.mrf.mxu1 }
 0x313   :  { %v1136_v59 = vmul.f32 %v1022_v22, %v3381_v12  ;;  %v2728_v12 = vld [vmem:[%s3765_s6 + $0x130] sm:$0xff] }
 0x314   :  { %v950_v34 = vpop.f32.mrf.mxu2  ;;  %v974_v40 = vpop.f32.mrf.mxu3  ;;  %v2736_v22 = vld [vmem:[%s3765_s6 + $0x170] sm:$0xff]  ;;  %1950 = vmatpush.bf16.msra.mxu2 %v2728_v12 }
 0x315   :  { %v1133_v48 = vmul.f32 %v950_v34, %v3342_v63  ;;  %v1134_v10 = vmul.f32 %v974_v40, %v3338_v62  ;;  %v1182_v51 = vpack.c.bf16 %v1136_v59, %v1135_v30  ;;  %1974 = vmatpush.bf16.msrb.mxu3 %v2736_v22  ;;  %v2751_v62 = vld [vmem:[%s3765_s6 + $0x1e8] sm:$0xff] }
 0x316   :  { %2023 = vmatpush.bf16.msrb.mxu1 %v2751_v62 }
 0x317   :  { %v1000_v60 = vpop.f32.mrf.mxu0  ;;  %v1181_v63 = vpack.c.bf16 %v1134_v10, %v1133_v48  ;;  %v1231_v29 = vunpack.c.l.b16 %v1182_v51  ;;  %v1232_v30 = vunpack.c.h.b16 %v1182_v51 }
 0x318   :  { %v1143_v0 = vmul.f32 %v1000_v60, %v3358_v24  ;;  %v2735_v60 = vld [vmem:[%s3765_s6 + $0x168] sm:$0xff] }
 0x319   :  { %1975 = vmatpush.bf16.msrb.mxu3 %v2735_v60  ;;  %v1229_v22 = vunpack.c.l.b16 %v1181_v63 }
 0x31a   :  { %v1024_v55 = vpop.f32.mrf.mxu1 }
 0x31b   :  { %v1144_v46 = vmul.f32 %v1024_v55, %v3387_v13  ;;  %v2727_v13 = vld [vmem:[%s3765_s6 + $0x128] sm:$0xff]  ;;  %v1230_v55 = vunpack.c.h.b16 %v1181_v63  ;;  %v2741_v63 = vld [vmem:[%s3765_s6 + $0x198] sm:$0xff] }
 0x31c   :  { %v952_v27 = vpop.f32.mrf.mxu2  ;;  %v976_v34 = vpop.f32.mrf.mxu3  ;;  %1951 = vmatpush.bf16.msra.mxu2 %v2727_v13  ;;  %v2749_v13 = vld [vmem:[%s3765_s6 + $0x1d8] sm:$0xff] }
 0x31d   :  { %v1186_v40 = vpack.c.bf16 %v1144_v46, %v1143_v0  ;;  %v1141_v59 = vmul.f32 %v952_v27, %v3365_v21  ;;  %v1142_v24 = vmul.f32 %v976_v34, %v3363_v3  ;;  %v2742_v3 = vld [vmem:[%s3765_s6 + $0x1a0] sm:$0xff] }
 0x31e   :  { %v2750_v21 = vld [vmem:[%s3765_s6 + $0x1e0] sm:$0xff]  ;;  %2000 = vmatpush.bf16.msra.mxu0 %v2742_v3  ;;  %v2740_v3 = vld [vmem:[%s3765_s6 + $0x190] sm:$0xff] }
 0x31f   :  { %v1239_v48 = vunpack.c.l.b16 %v1186_v40  ;;  %v1240_v10 = vunpack.c.h.b16 %v1186_v40  ;;  %v1185_v12 = vpack.c.bf16 %v1142_v24, %v1141_v59  ;;  %v1003_v0 = vpop.f32.mrf.mxu0  ;;  %2024 = vmatpush.bf16.msrb.mxu1 %v2750_v21  ;;  %v2726_v27 = vld [vmem:[%s3765_s6 + $0x120] sm:$0xff]  ;;  %v2748_v21 = vld [vmem:[%s3765_s6 + $0x1d0] sm:$0xff] }
 0x320   :  { %v2734_v34 = vld [vmem:[%s3765_s6 + $0x160] sm:$0xff]  ;;  %1952 = vmatpush.bf16.msra.mxu2 %v2726_v27 }
 0x321   :  { %v1279_v46 = vpack.c.b16 %v1239_v48, %v1231_v29  ;;  %v1280_v49 = vpack.c.b16 %v1240_v10, %v1232_v30  ;;  %v1237_v62 = vunpack.c.l.b16 %v1185_v12  ;;  %v1238_v51 = vunpack.c.h.b16 %v1185_v12  ;;  %1976 = vmatpush.bf16.msrb.mxu3 %v2734_v34  ;;  %v2725_v30 = vld [vmem:[%s3765_s6 + $0x118] sm:$0xff] }
 0x322   :  { %v1027_v40 = vpop.f32.mrf.mxu1  ;;  %v2733_v48 = vld [vmem:[%s3765_s6 + $0x158] sm:$0xff]  ;;  %2001 = vmatpush.bf16.msra.mxu0 %v2741_v63  ;;  %v2731_v63 = vld [vmem:[%s3765_s6 + $0x148] sm:$0xff] }
 0x323   :  { %v1277_v59 = vpack.c.b16 %v1237_v62, %v1229_v22  ;;  %v1278_v24 = vpack.c.b16 %v1238_v51, %v1230_v55  ;;  %1909 = vmatmul.bf16.vlgmr.msrb.gmra.mxu0 %v1279_v46  ;;  %1933 = vmatmul.bf16.vlgmr.msra.gmra.mxu1 %v1280_v49  ;;  %v1152_v10 = vmul.f32 %v1027_v40, %v3401_v18  ;;  %v2724_v18 = vld [vmem:[%s3765_s6 + $0x110] sm:$0xff] }
 0x324   :  { %v955_v60 = vpop.f32.mrf.mxu2  ;;  %v979_v29 = vpop.f32.mrf.mxu3  ;;  %2025 = vmatpush.bf16.msrb.mxu1 %v2749_v13  ;;  %v1151_v22 = vmul.f32 %v1003_v0, %v3367_v7  ;;  %1953 = vmatpush.bf16.msra.mxu2 %v2725_v30  ;;  %v2732_v49 = vld [vmem:[%s3765_s6 + $0x150] sm:$0xff]  ;;  %v2747_v0 = vld [vmem:[%s3765_s6 + $0x1c8] sm:$0xff] }
 0x325   :  { %1861 = vmatmul.bf16.vlgmr.msrb.gmra.mxu2 %v1277_v59  ;;  %1885 = vmatmul.bf16.vlgmr.msra.gmra.mxu3 %v1278_v24  ;;  %v1149_v55 = vmul.f32 %v955_v60, %v3371_v11  ;;  %v1150_v46 = vmul.f32 %v979_v29, %v3377_v36  ;;  %v2739_v36 = vld [vmem:[%s3765_s6 + $0x188] sm:$0xff] }
 0x326   :  { %1977 = vmatpush.bf16.msrb.mxu3 %v2733_v48  ;;  %v1190_v62 = vpack.c.bf16 %v1152_v10, %v1151_v22  ;;  %2002 = vmatpush.bf16.msra.mxu0 %v2740_v3 }
 0x327   :  { %v1005_v12 = vpop.f32.mrf.mxu0  ;;  %v1189_v27 = vpack.c.bf16 %v1150_v46, %v1149_v55 }
 0x328   :  { %2026 = vmatpush.bf16.msrb.mxu1 %v2748_v21  ;;  %v1159_v7 = vmul.f32 %v1005_v12, %v3385_v2  ;;  %1954 = vmatpush.bf16.msra.mxu2 %v2724_v18  ;;  %v1247_v13 = vunpack.c.l.b16 %v1190_v62  ;;  %v1248_v60 = vunpack.c.h.b16 %v1190_v62  ;;  %v2722_v18 = vld [vmem:[%s3765_s6 + $0x100] sm:$0xff] }
 0x329   :  { %v1245_v12 = vunpack.c.l.b16 %v1189_v27  ;;  %v1246_v3 = vunpack.c.h.b16 %v1189_v27 }
 0x32a   :  { %v1029_v51 = vpop.f32.mrf.mxu1  ;;  %1978 = vmatpush.bf16.msrb.mxu3 %v2732_v49  ;;  %2003 = vmatpush.bf16.msra.mxu0 %v2739_v36  ;;  %v2730_v49 = vld [vmem:[%s3765_s6 + $0x140] sm:$0xff] }
 0x32b   :  { %v1160_v11 = vmul.f32 %v1029_v51, %v3409_v1  ;;  %v2723_v1 = vld [vmem:[%s3765_s6 + $0x108] sm:$0xff] }
 0x32c   :  { %v957_v34 = vpop.f32.mrf.mxu2  ;;  %v981_v40 = vpop.f32.mrf.mxu3  ;;  %2027 = vmatpush.bf16.msrb.mxu1 %v2747_v0  ;;  %1955 = vmatpush.bf16.msra.mxu2 %v2723_v1 }
 0x32d   :  { %v1194_v59 = vpack.c.bf16 %v1160_v11, %v1159_v7  ;;  %v1157_v24 = vmul.f32 %v957_v34, %v3389_v14  ;;  %v1158_v2 = vmul.f32 %v981_v40, %v3391_v15  ;;  %v2738_v14 = vld [vmem:[%s3765_s6 + $0x180] sm:$0xff] }
 0x32e   :  { %v2746_v15 = vld [vmem:[%s3765_s6 + $0x1c0] sm:$0xff]  ;;  %1979 = vmatpush.bf16.msrb.mxu3 %v2731_v63  ;;  %2004 = vmatpush.bf16.msra.mxu0 %v2738_v14 }
 0x32f   :  { %v1255_v29 = vunpack.c.l.b16 %v1194_v59  ;;  %v1256_v30 = vunpack.c.h.b16 %v1194_v59  ;;  %v1193_v48 = vpack.c.bf16 %v1158_v2, %v1157_v24  ;;  %v1008_v10 = vpop.f32.mrf.mxu0 }
 0x330   :  { %2028 = vmatpush.bf16.msrb.mxu1 %v2746_v15  ;;  %1956 = vmatpush.bf16.msra.mxu2 %v2722_v18  ;;  %v1167_v34 = vmul.f32 %v1008_v10, %v3393_v16 }
 0x331   :  { %v1253_v21 = vunpack.c.l.b16 %v1193_v48  ;;  %v1254_v22 = vunpack.c.h.b16 %v1193_v48  ;;  %v1287_v55 = vpack.c.b16 %v1255_v29, %v1247_v13  ;;  %v1288_v46 = vpack.c.b16 %v1256_v30, %v1248_v60 }
 0x332   :  { %v1032_v62 = vpop.f32.mrf.mxu1  ;;  %1980 = vmatpush.bf16.msrb.mxu3 %v2730_v49 }
 0x333   :  { %1914 = vmatmul.bf16.gmra.mxu0 %v1287_v55  ;;  %1938 = vmatmul.bf16.gmra.mxu1 %v1288_v46  ;;  %v1285_v51 = vpack.c.b16 %v1253_v21, %v1245_v12  ;;  %v1286_v7 = vpack.c.b16 %v1254_v22, %v1246_v3  ;;  %v1168_v0 = vmul.f32 %v1032_v62, %v3423_v42 }
 0x334   :  { %v960_v11 = vpop.f32.mrf.mxu2  ;;  %v984_v36 = vpop.f32.mrf.mxu3 }
 0x335   :  { %1866 = vmatmul.bf16.gmra.mxu2 %v1285_v51  ;;  %1890 = vmatmul.bf16.gmra.mxu3 %v1286_v7  ;;  %v1165_v40 = vmul.f32 %v960_v11, %v3403_v19  ;;  %v1166_v59 = vmul.f32 %v984_v36, %v3407_v20  ;;  %v1198_v24 = vpack.c.bf16 %v1168_v0, %v1167_v34 }
 0x337   :  { %v1010_v27 = vpop.f32.mrf.mxu0  ;;  %v1197_v13 = vpack.c.bf16 %v1166_v59, %v1165_v40  ;;  %v1263_v14 = vunpack.c.l.b16 %v1198_v24  ;;  %v1264_v16 = vunpack.c.h.b16 %v1198_v24 }
 0x338   :  { %v1175_v1 = vmul.f32 %v1010_v27, %v3411_v37 }
 0x339   :  { %v1261_v12 = vunpack.c.l.b16 %v1197_v13  ;;  %v1262_v3 = vunpack.c.h.b16 %v1197_v13 }
 0x33a   :  { %v1034_v2 = vpop.f32.mrf.mxu1 }
 0x33b   :  { %v1176_v63 = vmul.f32 %v1034_v2, %v3433_v52 }
 0x33c   :  { %v962_v60 = vpop.f32.mrf.mxu2  ;;  %v986_v29 = vpop.f32.mrf.mxu3 }
 0x33d   :  { %v1202_v30 = vpack.c.bf16 %v1176_v63, %v1175_v1  ;;  %v1173_v48 = vmul.f32 %v962_v60, %v3413_v38  ;;  %v1174_v42 = vmul.f32 %v986_v29, %v3415_v41 }
 0x33f   :  { %v1271_v10 = vunpack.c.l.b16 %v1202_v30  ;;  %v1272_v19 = vunpack.c.h.b16 %v1202_v30  ;;  %v1201_v15 = vpack.c.bf16 %v1174_v42, %v1173_v48  ;;  %v1094_v20 = vpop.f32.mrf.mxu0 }
 0x340   :  { %v1139_v51 = vmul.f32 %v1094_v20, %v3425_v43 }
 0x341   :  { %v1269_v21 = vunpack.c.l.b16 %v1201_v15  ;;  %v1270_v37 = vunpack.c.h.b16 %v1201_v15  ;;  %v1295_v22 = vpack.c.b16 %v1271_v10, %v1263_v14  ;;  %v1296_v52 = vpack.c.b16 %v1272_v19, %v1264_v16  ;;  %v2755_v15 = vld [vmem:[%s3765_s6 + $0x208] sm:$0xff] }
 0x342   :  { %v1118_v55 = vpop.f32.mrf.mxu1  ;;  %2051 = vmatpush.bf16.msrb.mxu2 %v2755_v15 }
 0x343   :  { %1919 = vmatmul.bf16.gmra.mxu0 %v1295_v22  ;;  %1943 = vmatmul.bf16.gmra.mxu1 %v1296_v52  ;;  %v1293_v46 = vpack.c.b16 %v1269_v21, %v1261_v12  ;;  %v1294_v18 = vpack.c.b16 %v1270_v37, %v1262_v3  ;;  %v1140_v41 = vmul.f32 %v1118_v55, %v3443_v56  ;;  %v2756_v3 = vld [vmem:[%s3766_s7] sm:$0xff] }
 0x344   :  { %v1046_v38 = vpop.f32.mrf.mxu2  ;;  %v1070_v49 = vpop.f32.mrf.mxu3  ;;  %v2754_v21 = vld [vmem:[%s3765_s6 + $0x200] sm:$0xff] }
 0x345   :  { %1871 = vmatmul.bf16.gmra.mxu2 %v1293_v46  ;;  %1895 = vmatmul.bf16.gmra.mxu3 %v1294_v18  ;;  %v1137_v7 = vmul.f32 %v1046_v38, %v3429_v45  ;;  %v1138_v11 = vmul.f32 %v1070_v49, %v3431_v50  ;;  %v1184_v36 = vpack.c.bf16 %v1140_v41, %v1139_v51 }
 0x346   :  { %2052 = vmatpush.bf16.msrb.mxu2 %v2754_v21 }
 0x347   :  { %v1096_v62 = vpop.f32.mrf.mxu0  ;;  %v1183_v40 = vpack.c.bf16 %v1138_v11, %v1137_v7  ;;  %v1235_v63 = vunpack.c.l.b16 %v1184_v36  ;;  %v1236_v43 = vunpack.c.h.b16 %v1184_v36 }
 0x348   :  { %v1147_v27 = vmul.f32 %v1096_v62, %v3435_v54 }
 0x349   :  { %v1233_v29 = vunpack.c.l.b16 %v1183_v40  ;;  %v1234_v30 = vunpack.c.h.b16 %v1183_v40 }
 0x34a   :  { %v1120_v0 = vpop.f32.mrf.mxu1 }
 0x34b   :  { %v1148_v34 = vmul.f32 %v1120_v0, %v3477_v31 }
 0x34c   :  { %v1048_v59 = vpop.f32.mrf.mxu2  ;;  %v1072_v24 = vpop.f32.mrf.mxu3 }
 0x34d   :  { %v1188_v2 = vpack.c.bf16 %v1148_v34, %v1147_v27  ;;  %v1145_v1 = vmul.f32 %v1048_v59, %v3454_v17  ;;  %v1146_v56 = vmul.f32 %v1072_v24, %v3459_v44  ;;  %v2757_v44 = vld [vmem:[%s3766_s7 + $0x8] sm:$0xff] }
 0x34e   :  { %2113 = vmatpush.bf16.msrb.mxu0 %v2757_v44 }
 0x34f   :  { %v1243_v13 = vunpack.c.l.b16 %v1188_v2  ;;  %v1244_v45 = vunpack.c.h.b16 %v1188_v2  ;;  %v1187_v60 = vpack.c.bf16 %v1146_v56, %v1145_v1  ;;  %v1099_v50 = vpop.f32.mrf.mxu0 }
 0x350   :  { %v1155_v37 = vmul.f32 %v1099_v50, %v3469_v28 }
 0x351   :  { %v1283_v48 = vpack.c.b16 %v1243_v13, %v1235_v63  ;;  %v1284_v54 = vpack.c.b16 %v1244_v45, %v1236_v43  ;;  %v1241_v42 = vunpack.c.l.b16 %v1187_v60  ;;  %v1242_v31 = vunpack.c.h.b16 %v1187_v60 }
 0x352   :  { %v1123_v14 = vpop.f32.mrf.mxu1  ;;  %2114 = vmatpush.bf16.msrb.mxu0 %v2756_v3  ;;  %v3783_v3 = vld [vmem:[#allocation8_spill] sm:$0xff] }
 0x353   :  { %v1281_v16 = vpack.c.b16 %v1241_v42, %v1233_v29  ;;  %v1282_v10 = vpack.c.b16 %v1242_v31, %v1234_v30  ;;  %2005 = vmatmul.bf16.vlgmr.msra.gmra.mxu0 %v1283_v48  ;;  %2029 = vmatmul.bf16.vlgmr.msrb.gmra.mxu1 %v1284_v54  ;;  %v1156_v20 = vmul.f32 %v1123_v14, %v3507_v61 }
 0x354   :  { %v1051_v17 = vpop.f32.mrf.mxu2  ;;  %v1075_v19 = vpop.f32.mrf.mxu3 }
 0x355   :  { %1957 = vmatmul.bf16.vlgmr.msra.gmra.mxu2 %v1281_v16  ;;  %1981 = vmatmul.bf16.vlgmr.msrb.gmra.mxu3 %v1282_v10  ;;  %v1153_v22 = vmul.f32 %v1051_v17, %v3485_v35  ;;  %v1154_v52 = vmul.f32 %v1075_v19, %v3493_v53  ;;  %v1192_v55 = vpack.c.bf16 %v1156_v20, %v1155_v37 }
 0x357   :  { %v1101_v12 = vpop.f32.mrf.mxu0  ;;  %v1191_v38 = vpack.c.bf16 %v1154_v52, %v1153_v22  ;;  %v1251_v7 = vunpack.c.l.b16 %v1192_v55  ;;  %v1252_v35 = vunpack.c.h.b16 %v1192_v55 }
 0x358   :  { %v1163_v61 = vmul.f32 %v1101_v12, %v3509_v23 }
 0x359   :  { %v1249_v27 = vunpack.c.l.b16 %v1191_v38  ;;  %v1250_v23 = vunpack.c.h.b16 %v1191_v38 }
 0x35a   :  { %v1125_v46 = vpop.f32.mrf.mxu1 }
 0x35b   :  { %v1164_v18 = vmul.f32 %v1125_v46, %v3539_v26 }
 0x35c   :  { %v1053_v49 = vpop.f32.mrf.mxu2  ;;  %v1077_v41 = vpop.f32.mrf.mxu3 }
 0x35d   :  { %v1196_v62 = vpack.c.bf16 %v1164_v18, %v1163_v61  ;;  %v1161_v51 = vmul.f32 %v1053_v49, %v3523_v9  ;;  %v1162_v28 = vmul.f32 %v1077_v41, %v3531_v4 }
 0x35f   :  { %v1259_v11 = vunpack.c.l.b16 %v1196_v62  ;;  %v1260_v53 = vunpack.c.h.b16 %v1196_v62  ;;  %v1195_v36 = vpack.c.bf16 %v1162_v28, %v1161_v51  ;;  %v1104_v0 = vpop.f32.mrf.mxu0 }
 0x360   :  { %v1171_v63 = vmul.f32 %v1104_v0, %v3547_v32 }
 0x361   :  { %v1257_v34 = vunpack.c.l.b16 %v1195_v36  ;;  %v1258_v26 = vunpack.c.h.b16 %v1195_v36  ;;  %v1291_v40 = vpack.c.b16 %v1259_v11, %v1251_v7  ;;  %v1292_v59 = vpack.c.b16 %v1260_v53, %v1252_v35 }
 0x362   :  { %v1128_v24 = vpop.f32.mrf.mxu1 }
 0x363   :  { %2010 = vmatmul.bf16.gmra.mxu0 %v1291_v40  ;;  %2034 = vmatmul.bf16.gmra.mxu1 %v1292_v59  ;;  %v1289_v2 = vpack.c.b16 %v1257_v34, %v1249_v27  ;;  %v1290_v1 = vpack.c.b16 %v1258_v26, %v1250_v23  ;;  %v1172_v4 = vmul.f32 %v1128_v24, %v3571_v5 }
 0x364   :  { %v1056_v9 = vpop.f32.mrf.mxu2  ;;  %v1080_v56 = vpop.f32.mrf.mxu3 }
 0x365   :  { %1962 = vmatmul.bf16.gmra.mxu2 %v1289_v2  ;;  %1986 = vmatmul.bf16.gmra.mxu3 %v1290_v1  ;;  %v1169_v43 = vmul.f32 %v1056_v9, %v3561_v47  ;;  %v1170_v13 = vmul.f32 %v1080_v56, %v3569_v25  ;;  %v1200_v60 = vpack.c.bf16 %v1172_v4, %v1171_v63 }
 0x367   :  { %v1106_v45 = vpop.f32.mrf.mxu0  ;;  %v1199_v48 = vpack.c.bf16 %v1170_v13, %v1169_v43  ;;  %v1267_v32 = vunpack.c.l.b16 %v1200_v60  ;;  %v1268_v16 = vunpack.c.h.b16 %v1200_v60 }
 0x368   :  { %v1179_v29 = vmul.f32 %v1106_v45, %v3573_v6 }
 0x369   :  { %v1265_v17 = vunpack.c.l.b16 %v1199_v48  ;;  %v1266_v19 = vunpack.c.h.b16 %v1199_v48 }
 0x36a   :  { %v1130_v50 = vpop.f32.mrf.mxu1 }
 0x36b   :  { %v1180_v30 = vmul.f32 %v1130_v50, %v3575_v8 }
 0x36c   :  { %v1058_v54 = vpop.f32.mrf.mxu2  ;;  %v1082_v42 = vpop.f32.mrf.mxu3 }
 0x36d   :  { %v1204_v31 = vpack.c.bf16 %v1180_v30, %v1179_v29  ;;  %v1177_v14 = vmul.f32 %v1058_v54, %v3577_v57  ;;  %v1178_v5 = vmul.f32 %v1082_v42, %v3579_v39  ;;  %v3782_v57 = vld [vmem:[#allocation7_spill] sm:$0xff] }
 0x36f   :  { %v1275_v47 = vunpack.c.l.b16 %v1204_v31  ;;  %v1276_v10 = vunpack.c.h.b16 %v1204_v31  ;;  %v1203_v25 = vpack.c.bf16 %v1178_v5, %v1177_v14 }
 0x371   :  { %v1273_v44 = vunpack.c.l.b16 %v1203_v25  ;;  %v1274_v15 = vunpack.c.h.b16 %v1203_v25  ;;  %v1299_v6 = vpack.c.b16 %v1275_v47, %v1267_v32  ;;  %v1300_v20 = vpack.c.b16 %v1276_v10, %v1268_v16 }
 0x373   :  { %2015 = vmatmul.bf16.gmra.mxu0 %v1299_v6  ;;  %2039 = vmatmul.bf16.gmra.mxu1 %v1300_v20  ;;  %v1297_v8 = vpack.c.b16 %v1273_v44, %v1265_v17  ;;  %v1298_v12 = vpack.c.b16 %v1274_v15, %v1266_v19 }
 0x375   :  { %1967 = vmatmul.bf16.gmra.mxu2 %v1297_v8  ;;  %1991 = vmatmul.bf16.gmra.mxu3 %v1298_v12 }
 0x383   :  { %2666 = vmatmul.msk.bf16.vlgmr.msrb.gmra.mxu0 %vm246_vm3, %v3223_v58 }
 0x385   :  { %2654 = vmatmul.msk.bf16.vlgmr.msrb.gmra.mxu2 %vm246_vm3, %v3303_v33 }
 0x395   :  { %2655 = vmatmul.msk.bf16.gmra.mxu2 %vm246_vm3, %v3782_v57 }
 0x3a0   :  { %v1910_v39 = vpop.f32.mrf.mxu0  ;;  %v1934_v21 = vpop.f32.mrf.mxu1 }
 0x3a5   :  { %2656 = vmatmul.msk.bf16.gmra.mxu2 %vm246_vm3, %v3783_v3 }
 0x3a8   :  { %v1862_v37 = vpop.f32.mrf.mxu2  ;;  %v1886_v22 = vpop.f32.mrf.mxu3 }
 0x3a9   :  { %v1887_v52 = vadd.f32 %v1886_v22, %v1862_v37  ;;  %v1912_v61 = vpop.f32.mrf.mxu0  ;;  %v1936_v49 = vpop.f32.mrf.mxu1 }
 0x3ab   :  { %v1911_v55 = vadd.f32 %v1910_v39, %v1887_v52 }
 0x3ad   :  { %v1935_v46 = vadd.f32 %v1934_v21, %v1911_v55 }
 0x3b0   :  { %v1864_v18 = vpop.f32.mrf.mxu2  ;;  %v1888_v38 = vpop.f32.mrf.mxu3 }
 0x3b1   :  { %v1889_v58 = vadd.f32 %v1888_v38, %v1864_v18  ;;  %v1915_v7 = vpop.f32.mrf.mxu0  ;;  %v1939_v11 = vpop.f32.mrf.mxu1 }
 0x3b3   :  { %v1913_v41 = vadd.f32 %v1912_v61, %v1889_v58 }
 0x3b5   :  { %v1937_v33 = vadd.f32 %v1936_v49, %v1913_v41 }
 0x3b8   :  { %v1867_v62 = vpop.f32.mrf.mxu2  ;;  %v1891_v51 = vpop.f32.mrf.mxu3 }
 0x3b9   :  { %v1892_v28 = vadd.f32 %v1891_v51, %v1867_v62  ;;  %v1917_v40 = vpop.f32.mrf.mxu0  ;;  %v1941_v59 = vpop.f32.mrf.mxu1 }
 0x3bb   :  { %v1916_v35 = vadd.f32 %v1915_v7, %v1892_v28 }
 0x3bd   :  { %v1940_v53 = vadd.f32 %v1939_v11, %v1916_v35 }
 0x3c0   :  { %v1869_v36 = vpop.f32.mrf.mxu2  ;;  %v1893_v23 = vpop.f32.mrf.mxu3 }
 0x3c1   :  { %v1920_v9 = vpop.f32.mrf.mxu0  ;;  %v1944_v56 = vpop.f32.mrf.mxu1  ;;  %v1894_v10 = vadd.f32 %v1893_v23, %v1869_v36 }
 0x3c3   :  { %v1918_v44 = vadd.f32 %v1917_v40, %v1894_v10 }
 0x3c5   :  { %v1942_v12 = vadd.f32 %v1941_v59, %v1918_v44 }
 0x3c8   :  { %v1872_v0 = vpop.f32.mrf.mxu2  ;;  %v1896_v24 = vpop.f32.mrf.mxu3 }
 0x3c9   :  { %v1922_v13 = vpop.f32.mrf.mxu0  ;;  %v1946_v60 = vpop.f32.mrf.mxu1  ;;  %v1897_v61 = vadd.f32 %v1896_v24, %v1872_v0 }
 0x3d0   :  { %v1874_v27 = vpop.f32.mrf.mxu2  ;;  %v1898_v43 = vpop.f32.mrf.mxu3 }
 0x3d1   :  { %v2006_v29 = vpop.f32.mrf.mxu0  ;;  %v2030_v48 = vpop.f32.mrf.mxu1  ;;  %v1899_v18 = vadd.f32 %v1898_v43, %v1874_v27 }
 0x3d3   :  { %v1923_v62 = vadd.f32 %v1922_v13, %v1899_v18 }
 0x3d8   :  { %v1958_v34 = vpop.f32.mrf.mxu2  ;;  %v1982_v50 = vpop.f32.mrf.mxu3 }
 0x3d9   :  { %v1959_v26 = vadd.f32 %v1958_v34, %v1935_v46  ;;  %v2008_v31 = vpop.f32.mrf.mxu0  ;;  %v2032_v14 = vpop.f32.mrf.mxu1 }
 0x3db   :  { %v1983_v5 = vadd.f32 %v1982_v50, %v1959_v26 }
 0x3dd   :  { %v2007_v25 = vadd.f32 %v2006_v29, %v1983_v5  ;;  %v2770_v29 = vld [vmem:[%s3762_s3] sm:$0xff]  ;;  %s2802_s3 = smov [#allocation2]  }
 0x3df   :  { %v2031_v15 = vadd.f32 %v2030_v48, %v2007_v25 }
 0x3e0   :  { %v1960_v2 = vpop.f32.mrf.mxu2  ;;  %v1984_v54 = vpop.f32.mrf.mxu3 }
 0x3e1   :  { %v1961_v1 = vadd.f32 %v1960_v2, %v1937_v33  ;;  %v2011_v19 = vpop.f32.mrf.mxu0  ;;  %v2035_v20 = vpop.f32.mrf.mxu1  ;;  %v1921_v33 = vadd.f32 %v1920_v9, %v1897_v61 }
 0x3e3   :  { %v1985_v32 = vadd.f32 %v1984_v54, %v1961_v1  ;;  %v1945_v11 = vadd.f32 %v1944_v56, %v1921_v33  ;;  %v3785_v54 = vld [vmem:[#allocation5_spill] sm:$0xff] }
 0x3e5   :  { %v2009_v17 = vadd.f32 %v2008_v31, %v1985_v32 }
 0x3e7   :  { %v2033_v6 = vadd.f32 %v2032_v14, %v2009_v17  ;;  %v2771_v14 = vld [vmem:[%s3767_s8] sm:$0xff]  ;;  %s2166_s8 = sshll.u32 %s2802_s3, 4  ;;  %s2167_s8 = int_to_ptr.vmem [resolvable:$true] %s2166_s8 }
 0x3e8   :  { %v1963_v4 = vpop.f32.mrf.mxu2  ;;  %v1987_v16 = vpop.f32.mrf.mxu3  ;;  %v2123_v5 = vperm.slane %v2771_v14, 4 }
 0x3e9   :  { %v1964_v63 = vadd.f32 %v1963_v4, %v1940_v53  ;;  %v2013_v22 = vpop.f32.mrf.mxu0  ;;  %v2037_v38 = vpop.f32.mrf.mxu1  ;;  %v1947_v53 = vadd.f32 %v1946_v60, %v1923_v62 }
 0x3eb   :  { %v1988_v52 = vadd.f32 %v1987_v16, %v1964_v63  ;;  %v3786_v16 = vld [vmem:[#allocation6_spill] sm:$0xff] }
 0x3ed   :  { %v2012_v58 = vadd.f32 %v2011_v19, %v1988_v52 }
 0x3ef   :  { %v2036_v51 = vadd.f32 %v2035_v20, %v2012_v58 }
 0x3f0   :  { %v1965_v45 = vpop.f32.mrf.mxu2  ;;  %v1989_v3 = vpop.f32.mrf.mxu3 }
 0x3f1   :  { %v1966_v21 = vadd.f32 %v1965_v45, %v1942_v12  ;;  %v2016_v7 = vpop.f32.mrf.mxu0  ;;  %v2040_v59 = vpop.f32.mrf.mxu1 }
 0x3f3   :  { %v1990_v55 = vadd.f32 %v1989_v3, %v1966_v21 }
 0x3f5   :  { %v2014_v49 = vadd.f32 %v2013_v22, %v1990_v55 }
 0x3f7   :  { %v2038_v28 = vadd.f32 %v2037_v38, %v2014_v49 }
 0x3f8   :  { %v1968_v30 = vpop.f32.mrf.mxu2  ;;  %v1992_v41 = vpop.f32.mrf.mxu3 }
 0x3f9   :  { %v1969_v34 = vadd.f32 %v1968_v30, %v1945_v11  ;;  %v2018_v1 = vpop.f32.mrf.mxu0  ;;  %v2042_v63 = vpop.f32.mrf.mxu1 }
 0x3fb   :  { %v1993_v27 = vadd.f32 %v1992_v41, %v1969_v34 }
 0x3fd   :  { %v2017_v4 = vadd.f32 %v2016_v7, %v1993_v27 }
 0x3ff   :  { %v2041_v43 = vadd.f32 %v2040_v59, %v2017_v4 }
 0x400   :  { %v1970_v42 = vpop.f32.mrf.mxu2  ;;  %v1994_v0 = vpop.f32.mrf.mxu3 }
 0x401   :  { %v1971_v26 = vadd.f32 %v1970_v42, %v1947_v53  ;;  %v2116_v30 = vpop.f32.mrf.mxu0 }
 0x403   :  { %v1995_v24 = vadd.f32 %v1994_v0, %v1971_v26 }
 0x405   :  { %v2019_v9 = vadd.f32 %v2018_v1, %v1995_v24 }
 0x407   :  { %v2043_v13 = vadd.f32 %v2042_v63, %v2019_v9 }
 0x408   :  { %v2054_v47 = vpop.f32.mrf.mxu2 }
 0x409   :  { %v2055_v57 = vadd.f32 %v2054_v47, %v2031_v15  ;;  %v2118_v10 = vpop.f32.mrf.mxu0 }
 0x410   :  { %v2056_v8 = vpop.f32.mrf.mxu2 }
 0x411   :  { %v2057_v39 = vadd.f32 %v2056_v8, %v2033_v6  ;;  %v2128_v6 = vpack.c.bf16 %v2771_v14, %v2771_v14 }
 0x413   :  { %v2069_v37 = vpack.c.bf16 %v2057_v39, %v2055_v57  ;;  %v2135_v12 = vshrl.u32 %v2128_v6, 16  ;;  %v2133_v39 = vpop.permute.xlu2 %2132 }
 0x414   :  { %v2138_v3 = vrot.slane %v2133_v39, 6 }
 0x415   :  { %v2137_v57 = vrot.slane %v2135_v12, 2 }
 0x418   :  { %v2059_v46 = vpop.f32.mrf.mxu2 }
 0x419   :  { %v2060_v36 = vadd.f32 %v2059_v46, %v2036_v51 }
 0x420   :  { %v2061_v35 = vpop.f32.mrf.mxu2 }
 0x421   :  { %v2062_v23 = vadd.f32 %v2061_v35, %v2038_v28 }
 0x423   :  { %v2070_v40 = vpack.c.bf16 %v2062_v23, %v2060_v36 }
 0x428   :  { %v2064_v2 = vpop.f32.mrf.mxu2 }
 0x429   :  { %v2065_v50 = vadd.f32 %v2064_v2, %v2041_v43 }
 0x430   :  { %v2066_v45 = vpop.f32.mrf.mxu2 }
 0x431   :  { %v2067_v56 = vadd.f32 %v2066_v45, %v2043_v13 }
 0x433   :  { %v2071_v60 = vpack.c.bf16 %v2067_v56, %v2065_v50 }
 0x435   :  { %2077 = vmatpush.bf16.msra.mxu3 %v2071_v60 }
 0x439   :  { %2078 = vmatpush.bf16.msra.mxu3 %v2070_v40 }
 0x43d   :  { %2079 = vmatpush.bf16.msra.mxu3 %v2069_v37 }
 0x440   :  { %2657 = vmatmul.msk.bf16.vlgmr.msra.gmra.mxu3 %vm3784_vm6, %v2770_v29 }
 0x4c3   :  { %v2081_v48 = vpop.f32.mrf.mxu3 }
 0x4c4   :  { %v2086_v42 = vmul.f32 %v2081_v48, %v3785_v54 }
 0x4c6   :  { %v2121_v31 = vadd.f32 %v2116_v30, %v2086_v42 }
 0x4c8   :  { %v2124_v25 = vadd.f32 %v2123_v5, %v2121_v31 }
 0x4ca   :  { %v2126_v44 = vmax.f32 %v2124_v25, 0.0 }
 0x4cb   :  { %v2083_v32 = vpop.f32.mrf.mxu3 }
 0x4cc   :  { %v2087_v47 = vmul.f32 %v2083_v32, %v3786_v16 }
 0x4ce   :  { %v2122_v17 = vadd.f32 %v2118_v10, %v2087_v47 }
 0x4d0   :  { %v2125_v19 = vadd.f32 %v2123_v5, %v2122_v17 }
 0x4d2   :  { %v2127_v15 = vmax.f32 %v2125_v19, 0.0 }
 0x4d4   :  { %v2129_v20 = vpack.c.bf16 %v2127_v15, %v2126_v44 }
 0x4d6   :  { %v2144_v8 = vsel %vm246_vm3, %v2129_v20, 0 }
 0x4d7   :  { %2153 = vmatpush.bf16.xpose.msrb.mxu3 %v2144_v8 }
 0x4de   :  { %2667 = vmatmul.msk.bf16.vlgmr.msrb.gmra.mxu3 %vm246_vm3, %v2137_v57 }
 0x561   :  { %v2155_v21 = vpop.f32.mrf.mxu3 }
 0x562   :  { %v2156_v37 = vadd.f32 %v2155_v21, %v2138_v3 }
 0x564   :  { %2160 = vst.msk [vmem:[#allocation2] sm:$0x1] %vm2159_vm7, %v2156_v37 }
 0x565   :  { %2171 = dma.vmem_to_hbm [thread:$0]  %s2167_s8, 16, %s2169_s13, [#allocation3]  }
 0x569   :  { %v2157_v22 = vpop.f32.mrf.mxu3 }
 0x56a   :  { %2796 = dma.done.wait [#allocation3], 16  }
 0x56b   :  { %2797 = vsyncadd [#allocation3], 4294967280 }
 0x56c   :  { %2176 = vsyncpa [#allocation3], 1 }

</bundles_post_ra>
